<compile_context>
chip_gen: v7x
topology: tpu7x:2x2x1
jax: 0.10.0
libtpu: 0.0.40
codegen_flags: <defaults>
</compile_context>

<pallas_src>
import functools
import numpy as np
import jax
import jax.numpy as jnp
from jax.experimental import pallas as pl
from jax.experimental.pallas import tpu as pltpu


def _cost_estimate(T, n_users, n_v, n_u, emb, n_hgcn, n_lg):
    per_step = (2 * (2 * n_v) * emb * emb                                    # fusion linear1
                + (n_hgcn + 1) * (2 * n_v * emb * emb + 2 * n_v * n_v * emb)  # hgcn stack
                + 2 * n_u * n_v * emb                                         # coef2 projection
                + n_lg * (2 * n_u * emb * emb + 2 * n_u * n_u * emb))         # line conv
    flops = T * per_step
    transcendentals = T * (2 * n_v * emb + 4 * n_v)                           # tanh + exp
    bytes_accessed = 4 * (n_users * emb                                       # static (resident)
                          + (n_users + T * n_v) * emb                         # dyn_v writeback
                          + T * (n_u * emb
                                 + n_v * n_v + n_u * n_v + n_u * n_u
                                 + (3 + (n_hgcn + 1) + 2 * n_lg) * emb * emb))
    return pl.CostEstimate(flops=int(flops), transcendentals=int(transcendentals),
                           bytes_accessed=int(bytes_accessed))


# ---------------------------------------------------------------------------
# Fused per-time-step kernel body (grid=(T,)):
#   in-VMEM row gather -> gated fusion -> hypergraph conv stack -> line conv,
#   with dyn_v kept resident in the output VMEM block across all grid steps.
# ---------------------------------------------------------------------------
def _structural_kernel(guid_ref, didx_ref,               # SMEM int32 [T, n_v] (prefetched)
                       static_ref,                       # VMEM f32 [n_users, emb] (resident)
                       coef1_ref, coef2_ref, lg_ref,     # per-step dense coef blocks (f32)
                       w1_ref, b1_ref, w2_ref, b2_ref,   # gated-fusion params (per step)
                       hw_ref, lgw_ref, lgb_ref,         # hgcn / line-graph params (per step)
                       dynv_ref, featsu_ref,             # outputs (dyn_v resident; feats_u per t)
                       feats_buf,                        # VMEM scratch [2*n_v, emb] f32
                       *, n_users, n_v, n_hgcn_layers, n_lg_layers):
    f32 = jnp.float32
    t = pl.program_id(0)

    # Initialize the resident dyn_v buffer with the static user embeddings.
    @pl.when(t == 0)
    def _():
        dynv_ref[pl.ds(0, n_users), :] = static_ref[...]

    # ---- in-VMEM row gather: static rows -> feats_buf[:n_v], dynamic -> [n_v:] ----
    for i in range(n_v):
        feats_buf[i, :] = static_ref[guid_ref[t, i], :]
        feats_buf[n_v + i, :] = dynv_ref[didx_ref[t, i], :]
    feats = feats_buf[...]                                 # [2*n_v, emb]  (static ; dynamic)

    # ---- GatedFusionLayer: single stacked matmul for both fusion inputs ----
    h = jnp.tanh(jnp.dot(feats, w1_ref[...], preferred_element_type=f32) + b1_ref[...])
    s = jnp.sum(h * w2_ref[...], axis=-1, keepdims=True) + b2_ref[...]       # [2*n_v, 1]
    s0, s1 = s[:n_v], s[n_v:]
    m = jnp.maximum(s0, s1)                                # softmax over the 2-element stack axis
    e0 = jnp.exp(s0 - m)
    e1 = jnp.exp(s1 - m)
    inv = 1.0 / (e0 + e1)                                  # exact: [n_v,1], negligible cost
    x = feats[:n_v] * (e0 * inv) + feats[n_v:] * (e1 * inv)                  # [n_v, emb]

    # ---- HypergraphConv stack (bias-free linears, relu, dense coef matmuls) ----
    coef1 = coef1_ref[...]
    for i in range(n_hgcn_layers + 1):
        xw = jnp.dot(x, hw_ref[i], preferred_element_type=f32)
        x = jnp.maximum(jnp.dot(coef1, xw, preferred_element_type=f32), 0.0)

    # features_v written in place into the resident dyn_v block (recurrence).
    off = pl.multiple_of(n_users + t * n_v, n_v)
    dynv_ref[pl.ds(off, n_v), :] = x

    u = jnp.maximum(jnp.dot(coef2_ref[...], x, preferred_element_type=f32), 0.0)

    # ---- LineConv: acc = u; for i: u = lg @ (u @ W_i + b_i); acc += u ----
    acc = u
    cur = u
    lg = lg_ref[...]
    for i in range(n_lg_layers):
        cw = jnp.dot(cur, lgw_ref[i], preferred_element_type=f32) + lgb_ref[i]
        cur = jnp.dot(lg, cw, preferred_element_type=f32)
        acc = acc + cur
    featsu_ref[...] = acc                                  # features_u for step t


# ---------------------------------------------------------------------------
# StructuralLayerHyperRec.forward — single pallas_call over grid=(T,)
# ---------------------------------------------------------------------------
def structural_layer_forward(static_embeddings, step_data, params,
                             duid_trace_v, duid_trace_u,
                             *, n_hgcn_layers, n_lg_layers):
    n_users, emb = static_embeddings.shape
    T, n_v, _ = step_data['coef1'].shape
    n_u = step_data['coef2'].shape[1]
    n_lg_param = params['lg_w'].shape[1]
    total_v = n_users + T * n_v

    kern = functools.partial(_structural_kernel, n_users=n_users, n_v=n_v,
                             n_hgcn_layers=n_hgcn_layers, n_lg_layers=n_lg_layers)

    def step_idx(t, g, d):                                 # per-step stacked operand (3-D)
        return (t, 0, 0)

    def step_idx4(t, g, d):                                # per-step stacked operand (4-D)
        return (t, 0, 0, 0)

    grid_spec = pltpu.PrefetchScalarGridSpec(
        num_scalar_prefetch=2,                             # guid_v, dyn_idx -> SMEM
        grid=(T,),
        in_specs=[
            pl.BlockSpec((n_users, emb), lambda t, g, d: (0, 0)),      # static (resident)
            pl.BlockSpec((None, n_v, n_v), step_idx),                  # coef1
            pl.BlockSpec((None, n_u, n_v), step_idx),                  # coef2
            pl.BlockSpec((None, n_u, n_u), step_idx),                  # lg
            pl.BlockSpec((None, emb, emb), step_idx),                  # fus_w1
            pl.BlockSpec((None, 1, emb), step_idx),                    # fus_b1
            pl.BlockSpec((None, 1, emb), step_idx),                    # fus_w2
            pl.BlockSpec((None, 1, 1), step_idx),                      # fus_b2
            pl.BlockSpec((None, n_hgcn_layers + 1, emb, emb), step_idx4),  # hgcn_w
            pl.BlockSpec((None, n_lg_param, emb, emb), step_idx4),         # lg_w
            pl.BlockSpec((None, n_lg_param, 1, emb), step_idx4),           # lg_b
        ],
        out_specs=(
            pl.BlockSpec((total_v, emb), lambda t, g, d: (0, 0)),      # dyn_v (resident)
            pl.BlockSpec((None, n_u, emb), step_idx),                  # feats_u per step
        ),
        scratch_shapes=[pltpu.VMEM((2 * n_v, emb), jnp.float32)],
    )

    dyn_v, feats_u = pl.pallas_call(
        kern,
        out_shape=(jax.ShapeDtypeStruct((total_v, emb), jnp.float32),
                   jax.ShapeDtypeStruct((T, n_u, emb), jnp.float32)),
        grid_spec=grid_spec,
        compiler_params=pltpu.CompilerParams(dimension_semantics=("arbitrary",)),
        cost_estimate=_cost_estimate(T, n_users, n_v, n_u, emb,
                                     n_hgcn_layers, n_lg_layers),
    )(step_data['guid_v'], step_data['dyn_idx'], static_embeddings,
      step_data['coef1'], step_data['coef2'], step_data['lg'],
      params['fus_w1'], params['fus_b1'], params['fus_w2'], params['fus_b2'],
      params['hgcn_w'], params['lg_w'], params['lg_b'])

    dyn_u = jnp.concatenate([static_embeddings, feats_u.reshape(T * n_u, emb)], axis=0)
    final_u = jnp.take(dyn_u, duid_trace_u, axis=0)        # [n_users, T+1, emb]
    final_v = jnp.take(dyn_v, duid_trace_v, axis=0)        # [n_users, T+1, emb]
    return final_u, final_v


# ---------------------------------------------------------------------------
# Pure-JAX reference (mirrors the PyTorch forward, eval mode) for a sanity check.
# ---------------------------------------------------------------------------
def reference_forward(static_embeddings, step_data, params, duid_trace_v, duid_trace_u,
                      n_hgcn_layers, n_lg_layers):
    T = step_data['coef1'].shape[0]
    dyn_v = static_embeddings
    dyn_u = [static_embeddings]
    for t in range(T):
        guid = step_data['guid_v'][t]
        didx = step_data['dyn_idx'][t]
        feats = jnp.stack([static_embeddings[guid], dyn_v[didx]])          # [2, n_v, emb]
        h = jnp.tanh(feats @ params['fus_w1'][t] + params['fus_b1'][t])
        s = jnp.sum(h * params['fus_w2'][t], -1, keepdims=True) + params['fus_b2'][t]
        p = jax.nn.softmax(s, axis=0)
        x = jnp.sum(feats * p, axis=0)
        for i in range(n_hgcn_layers + 1):
            x = jnp.maximum(step_data['coef1'][t] @ (x @ params['hgcn_w'][t, i]), 0.0)
        u = jnp.maximum(step_data['coef2'][t] @ x, 0.0)
        acc, cur = u, u
        for i in range(n_lg_layers):
            cur = step_data['lg'][t] @ (cur @ params['lg_w'][t, i] + params['lg_b'][t, i])
            acc = acc + cur
        dyn_v = jnp.concatenate([dyn_v, x], axis=0)
        dyn_u.append(acc)
    dyn_u = jnp.concatenate(dyn_u, axis=0)
    return dyn_u[duid_trace_u], dyn_v[duid_trace_v]


# ---------------------------------------------------------------------------
# Synthetic graph / trace construction (stands in for data_preprocess.Subgraph
# and build_dynamic_uid_trace) — deterministic, built in-script.
# ---------------------------------------------------------------------------
def build_graphs(n_users, T, n_v, n_u, seed=0):
    rng = np.random.default_rng(seed)
    graphs = []
    for _ in range(T):
        guid_v = np.sort(rng.choice(n_users, size=n_v, replace=False)).astype(np.int64)
        coef1 = rng.uniform(size=(n_v, n_v)).astype(np.float32)
        coef1 /= coef1.sum(axis=1, keepdims=True)
        coef2 = rng.uniform(size=(n_u, n_v)).astype(np.float32)
        coef2 /= coef2.sum(axis=1, keepdims=True)
        lg = rng.uniform(size=(n_u, n_u)).astype(np.float32)
        lg /= lg.sum(axis=1, keepdims=True)
        graphs.append(dict(guid_v=guid_v, coef1=coef1, coef2=coef2, lg=lg))

    duid_trace_v = np.zeros((n_users, T + 1), np.int64)
    duid_trace_u = np.zeros((n_users, T + 1), np.int64)
    duid_trace_v[:, 0] = np.arange(n_users)
    duid_trace_u[:, 0] = np.arange(n_users)
    off_v, off_u = n_users, n_users
    for t, g in enumerate(graphs):
        duid_trace_v[:, t + 1] = duid_trace_v[:, t]
        duid_trace_u[:, t + 1] = duid_trace_u[:, t]
        for pos, uid in enumerate(g['guid_v']):
            duid_trace_v[uid, t + 1] = off_v + pos
            duid_trace_u[uid, t + 1] = off_u + pos
        off_v += n_v
        off_u += n_u
    return graphs, duid_trace_v, duid_trace_u


def build_steps(graphs_np, duid_trace_v_np):
    guid = np.stack([g['guid_v'] for g in graphs_np]).astype(np.int32)
    dyn_idx = np.stack([duid_trace_v_np[g['guid_v'], t]
                        for t, g in enumerate(graphs_np)]).astype(np.int32)
    return dict(
        guid_v=jnp.asarray(guid),
        dyn_idx=jnp.asarray(dyn_idx),
        coef1=jnp.asarray(np.stack([g['coef1'] for g in graphs_np]), jnp.float32),
        coef2=jnp.asarray(np.stack([g['coef2'] for g in graphs_np]), jnp.float32),
        lg=jnp.asarray(np.stack([g['lg'] for g in graphs_np]), jnp.float32),
    )


def init_params(key, T, emb, n_hgcn_layers, n_lg_layers):
    n_lg = max(n_lg_layers, 1)
    k1, k2, k3, k4 = jax.random.split(key, 4)
    return dict(
        fus_w1=0.1 * jax.random.normal(k1, (T, emb, emb), jnp.float32),
        fus_b1=jnp.zeros((T, 1, emb), jnp.float32),
        fus_w2=0.1 * jax.random.normal(k2, (T, 1, emb), jnp.float32),
        fus_b2=jnp.zeros((T, 1, 1), jnp.float32),
        hgcn_w=0.1 * jax.random.normal(k3, (T, n_hgcn_layers + 1, emb, emb), jnp.float32),
        lg_w=0.1 * jax.random.normal(k4, (T, n_lg, emb, emb), jnp.float32),
        lg_b=jnp.zeros((T, n_lg, 1, emb), jnp.float32),
    )


if __name__ == "__main__":
    n_users, emb = 16, 128          # emb multiple of 128 -> lane-dense tiles/stores
    T = 2                           # number of subgraphs / time steps
    n_v, n_u = 8, 8                 # per-subgraph node / hyperedge-entity counts
    n_hgcn_layers, n_lg_layers = 1, 2

    graphs_np, duid_trace_v_np, duid_trace_u_np = build_graphs(n_users, T, n_v, n_u, seed=0)
    step_data = build_steps(graphs_np, duid_trace_v_np)

    key = jax.random.PRNGKey(0)
    k_emb, k_par = jax.random.split(key)
    static_embeddings = jax.random.normal(k_emb, (n_users, emb), jnp.float32)
    params = init_params(k_par, T, emb, n_hgcn_layers, n_lg_layers)

    duid_trace_v = jnp.asarray(duid_trace_v_np.astype(np.int32))
    duid_trace_u = jnp.asarray(duid_trace_u_np.astype(np.int32))

    fwd = jax.jit(functools.partial(structural_layer_forward,
                                    n_hgcn_layers=n_hgcn_layers,
                                    n_lg_layers=n_lg_layers))
    final_u, final_v = fwd(static_embeddings, step_data, params, duid_trace_v, duid_trace_u)
    jax.block_until_ready((final_u, final_v))

    ref_u, ref_v = reference_forward(static_embeddings, step_data, params,
                                     duid_trace_v, duid_trace_u,
                                     n_hgcn_layers, n_lg_layers)
    err_u = float(jnp.max(jnp.abs(final_u - ref_u)))
    err_v = float(jnp.max(jnp.abs(final_v - ref_v)))

    assert final_u.shape == (n_users, T + 1, emb)
    assert final_v.shape == (n_users, T + 1, emb)
    assert bool(jnp.all(jnp.isfinite(final_u))) and bool(jnp.all(jnp.isfinite(final_v)))
    assert err_u < 0.1 and err_v < 0.1, (err_u, err_v)
    print("KERNEL_OK")
</pallas_src>

<mosaic_0001>
module attributes {stable_mosaic.version = 11 : i64} {
  func.func @_structural_kernel(%arg0: i32, %arg1: memref<2x8xi32, #tpu.memory_space<smem>>, %arg2: memref<2x8xi32, #tpu.memory_space<smem>>, %arg3: memref<16x128xf32, #tpu.memory_space<vmem>>, %arg4: memref<1x8x8xf32, #tpu.memory_space<vmem>>, %arg5: memref<1x8x8xf32, #tpu.memory_space<vmem>>, %arg6: memref<1x8x8xf32, #tpu.memory_space<vmem>>, %arg7: memref<1x128x128xf32, #tpu.memory_space<vmem>>, %arg8: memref<1x1x128xf32, #tpu.memory_space<vmem>>, %arg9: memref<1x1x128xf32, #tpu.memory_space<vmem>>, %arg10: memref<1x1x1xf32, #tpu.memory_space<vmem>>, %arg11: memref<1x2x128x128xf32, #tpu.memory_space<vmem>>, %arg12: memref<1x2x128x128xf32, #tpu.memory_space<vmem>>, %arg13: memref<1x2x1x128xf32, #tpu.memory_space<vmem>>, %arg14: memref<32x128xf32, #tpu.memory_space<vmem>>, %arg15: memref<1x8x128xf32, #tpu.memory_space<vmem>>, %arg16: memref<16x128xf32, #tpu.memory_space<vmem>>) attributes {dimension_semantics = [#tpu.dimension_semantics<arbitrary>], iteration_bounds = array<i64: 2>, scalar_prefetch = 2 : i64, scratch_operands = 1 : i64, tpu.core_type = #tpu.core_type<tc>, window_params = [{pipeline_mode = #tpu.pipeline_mode<synchronous>, transform_indices = @transform_0, window_bounds = array<i64: 16, 128>}, {transform_indices = @transform_1, window_bounds = array<i64: 1, 8, 8>}, {transform_indices = @transform_2, window_bounds = array<i64: 1, 8, 8>}, {transform_indices = @transform_3, window_bounds = array<i64: 1, 8, 8>}, {transform_indices = @transform_4, window_bounds = array<i64: 1, 128, 128>}, {transform_indices = @transform_5, window_bounds = array<i64: 1, 1, 128>}, {transform_indices = @transform_6, window_bounds = array<i64: 1, 1, 128>}, {transform_indices = @transform_7, window_bounds = array<i64: 1, 1, 1>}, {transform_indices = @transform_8, window_bounds = array<i64: 1, 2, 128, 128>}, {transform_indices = @transform_9, window_bounds = array<i64: 1, 2, 128, 128>}, {transform_indices = @transform_10, window_bounds = array<i64: 1, 2, 1, 128>}, {pipeline_mode = #tpu.pipeline_mode<synchronous>, transform_indices = @transform_11, window_bounds = array<i64: 32, 128>}, {transform_indices = @transform_12, window_bounds = array<i64: 1, 8, 128>}]} {
    %c0_i32 = arith.constant 0 : i32
    %0 = arith.cmpi eq, %arg0, %c0_i32 : i32
    %1 = arith.extui %0 : i1 to i32
    %c0_i32_0 = arith.constant 0 : i32
    %2 = arith.cmpi ne, %1, %c0_i32_0 : i32
    scf.if %2 {
      %c0_114 = arith.constant 0 : index
      %c0_115 = arith.constant 0 : index
      %216 = vector.load %arg3[%c0_114, %c0_115] : memref<16x128xf32, #tpu.memory_space<vmem>>, vector<16x128xf32>
      %c0_116 = arith.constant 0 : index
      %c0_117 = arith.constant 0 : index
      %217 = vector.load %arg14[%c0_116, %c0_117] : memref<32x128xf32, #tpu.memory_space<vmem>>, vector<16x128xf32>
      tpu.vector_store %arg14[%c0_116, %c0_117], %216 {strides = array<i32>} : memref<32x128xf32, #tpu.memory_space<vmem>>, vector<16x128xf32>,
    } else {
    }
    %3 = arith.index_cast %arg0 : i32 to index
    %c0 = arith.constant 0 : index
    %4 = memref.load %arg1[%3, %c0] : memref<2x8xi32, #tpu.memory_space<smem>>
    %5 = arith.index_cast %4 : i32 to index
    %c0_1 = arith.constant 0 : index
    %6 = vector.load %arg3[%5, %c0_1] : memref<16x128xf32, #tpu.memory_space<vmem>>, vector<1x128xf32>
    %7 = vector.shape_cast %6 : vector<1x128xf32> to vector<128xf32>
    %c0_2 = arith.constant 0 : index
    %c0_3 = arith.constant 0 : index
    %8 = vector.load %arg16[%c0_2, %c0_3] : memref<16x128xf32, #tpu.memory_space<vmem>>, vector<1x128xf32>
    %9 = vector.shape_cast %8 : vector<1x128xf32> to vector<128xf32>
    %10 = vector.shape_cast %7 : vector<128xf32> to vector<1x128xf32>
    tpu.vector_store %arg16[%c0_2, %c0_3], %10 {strides = array<i32>} : memref<16x128xf32, #tpu.memory_space<vmem>>, vector<1x128xf32>,
    %11 = arith.index_cast %arg0 : i32 to index
    %c0_4 = arith.constant 0 : index
    %12 = memref.load %arg2[%11, %c0_4] : memref<2x8xi32, #tpu.memory_space<smem>>
    %13 = arith.index_cast %12 : i32 to index
    %c0_5 = arith.constant 0 : index
    %14 = vector.load %arg14[%13, %c0_5] : memref<32x128xf32, #tpu.memory_space<vmem>>, vector<1x128xf32>
    %15 = vector.shape_cast %14 : vector<1x128xf32> to vector<128xf32>
    %c8 = arith.constant 8 : index
    %c0_6 = arith.constant 0 : index
    %16 = vector.load %arg16[%c8, %c0_6] : memref<16x128xf32, #tpu.memory_space<vmem>>, vector<1x128xf32>
    %17 = vector.shape_cast %16 : vector<1x128xf32> to vector<128xf32>
    %18 = vector.shape_cast %15 : vector<128xf32> to vector<1x128xf32>
    tpu.vector_store %arg16[%c8, %c0_6], %18 {strides = array<i32>} : memref<16x128xf32, #tpu.memory_space<vmem>>, vector<1x128xf32>,
    %19 = arith.index_cast %arg0 : i32 to index
    %c1 = arith.constant 1 : index
    %20 = memref.load %arg1[%19, %c1] : memref<2x8xi32, #tpu.memory_space<smem>>
    %21 = arith.index_cast %20 : i32 to index
    %c0_7 = arith.constant 0 : index
    %22 = vector.load %arg3[%21, %c0_7] : memref<16x128xf32, #tpu.memory_space<vmem>>, vector<1x128xf32>
    %23 = vector.shape_cast %22 : vector<1x128xf32> to vector<128xf32>
    %c1_8 = arith.constant 1 : index
    %c0_9 = arith.constant 0 : index
    %24 = vector.load %arg16[%c1_8, %c0_9] : memref<16x128xf32, #tpu.memory_space<vmem>>, vector<1x128xf32>
    %25 = vector.shape_cast %24 : vector<1x128xf32> to vector<128xf32>
    %26 = vector.shape_cast %23 : vector<128xf32> to vector<1x128xf32>
    tpu.vector_store %arg16[%c1_8, %c0_9], %26 {strides = array<i32>} : memref<16x128xf32, #tpu.memory_space<vmem>>, vector<1x128xf32>,
    %27 = arith.index_cast %arg0 : i32 to index
    %c1_10 = arith.constant 1 : index
    %28 = memref.load %arg2[%27, %c1_10] : memref<2x8xi32, #tpu.memory_space<smem>>
    %29 = arith.index_cast %28 : i32 to index
    %c0_11 = arith.constant 0 : index
    %30 = vector.load %arg14[%29, %c0_11] : memref<32x128xf32, #tpu.memory_space<vmem>>, vector<1x128xf32>
    %31 = vector.shape_cast %30 : vector<1x128xf32> to vector<128xf32>
    %c9 = arith.constant 9 : index
    %c0_12 = arith.constant 0 : index
    %32 = vector.load %arg16[%c9, %c0_12] : memref<16x128xf32, #tpu.memory_space<vmem>>, vector<1x128xf32>
    %33 = vector.shape_cast %32 : vector<1x128xf32> to vector<128xf32>
    %34 = vector.shape_cast %31 : vector<128xf32> to vector<1x128xf32>
    tpu.vector_store %arg16[%c9, %c0_12], %34 {strides = array<i32>} : memref<16x128xf32, #tpu.memory_space<vmem>>, vector<1x128xf32>,
    %35 = arith.index_cast %arg0 : i32 to index
    %c2 = arith.constant 2 : index
    %36 = memref.load %arg1[%35, %c2] : memref<2x8xi32, #tpu.memory_space<smem>>
    %37 = arith.index_cast %36 : i32 to index
    %c0_13 = arith.constant 0 : index
    %38 = vector.load %arg3[%37, %c0_13] : memref<16x128xf32, #tpu.memory_space<vmem>>, vector<1x128xf32>
    %39 = vector.shape_cast %38 : vector<1x128xf32> to vector<128xf32>
    %c2_14 = arith.constant 2 : index
    %c0_15 = arith.constant 0 : index
    %40 = vector.load %arg16[%c2_14, %c0_15] : memref<16x128xf32, #tpu.memory_space<vmem>>, vector<1x128xf32>
    %41 = vector.shape_cast %40 : vector<1x128xf32> to vector<128xf32>
    %42 = vector.shape_cast %39 : vector<128xf32> to vector<1x128xf32>
    tpu.vector_store %arg16[%c2_14, %c0_15], %42 {strides = array<i32>} : memref<16x128xf32, #tpu.memory_space<vmem>>, vector<1x128xf32>,
    %43 = arith.index_cast %arg0 : i32 to index
    %c2_16 = arith.constant 2 : index
    %44 = memref.load %arg2[%43, %c2_16] : memref<2x8xi32, #tpu.memory_space<smem>>
    %45 = arith.index_cast %44 : i32 to index
    %c0_17 = arith.constant 0 : index
    %46 = vector.load %arg14[%45, %c0_17] : memref<32x128xf32, #tpu.memory_space<vmem>>, vector<1x128xf32>
    %47 = vector.shape_cast %46 : vector<1x128xf32> to vector<128xf32>
    %c10 = arith.constant 10 : index
    %c0_18 = arith.constant 0 : index
    %48 = vector.load %arg16[%c10, %c0_18] : memref<16x128xf32, #tpu.memory_space<vmem>>, vector<1x128xf32>
    %49 = vector.shape_cast %48 : vector<1x128xf32> to vector<128xf32>
    %50 = vector.shape_cast %47 : vector<128xf32> to vector<1x128xf32>
    tpu.vector_store %arg16[%c10, %c0_18], %50 {strides = array<i32>} : memref<16x128xf32, #tpu.memory_space<vmem>>, vector<1x128xf32>,
    %51 = arith.index_cast %arg0 : i32 to index
    %c3 = arith.constant 3 : index
    %52 = memref.load %arg1[%51, %c3] : memref<2x8xi32, #tpu.memory_space<smem>>
    %53 = arith.index_cast %52 : i32 to index
    %c0_19 = arith.constant 0 : index
    %54 = vector.load %arg3[%53, %c0_19] : memref<16x128xf32, #tpu.memory_space<vmem>>, vector<1x128xf32>
    %55 = vector.shape_cast %54 : vector<1x128xf32> to vector<128xf32>
    %c3_20 = arith.constant 3 : index
    %c0_21 = arith.constant 0 : index
    %56 = vector.load %arg16[%c3_20, %c0_21] : memref<16x128xf32, #tpu.memory_space<vmem>>, vector<1x128xf32>
    %57 = vector.shape_cast %56 : vector<1x128xf32> to vector<128xf32>
    %58 = vector.shape_cast %55 : vector<128xf32> to vector<1x128xf32>
    tpu.vector_store %arg16[%c3_20, %c0_21], %58 {strides = array<i32>} : memref<16x128xf32, #tpu.memory_space<vmem>>, vector<1x128xf32>,
    %59 = arith.index_cast %arg0 : i32 to index
    %c3_22 = arith.constant 3 : index
    %60 = memref.load %arg2[%59, %c3_22] : memref<2x8xi32, #tpu.memory_space<smem>>
    %61 = arith.index_cast %60 : i32 to index
    %c0_23 = arith.constant 0 : index
    %62 = vector.load %arg14[%61, %c0_23] : memref<32x128xf32, #tpu.memory_space<vmem>>, vector<1x128xf32>
    %63 = vector.shape_cast %62 : vector<1x128xf32> to vector<128xf32>
    %c11 = arith.constant 11 : index
    %c0_24 = arith.constant 0 : index
    %64 = vector.load %arg16[%c11, %c0_24] : memref<16x128xf32, #tpu.memory_space<vmem>>, vector<1x128xf32>
    %65 = vector.shape_cast %64 : vector<1x128xf32> to vector<128xf32>
    %66 = vector.shape_cast %63 : vector<128xf32> to vector<1x128xf32>
    tpu.vector_store %arg16[%c11, %c0_24], %66 {strides = array<i32>} : memref<16x128xf32, #tpu.memory_space<vmem>>, vector<1x128xf32>,
    %67 = arith.index_cast %arg0 : i32 to index
    %c4 = arith.constant 4 : index
    %68 = memref.load %arg1[%67, %c4] : memref<2x8xi32, #tpu.memory_space<smem>>
    %69 = arith.index_cast %68 : i32 to index
    %c0_25 = arith.constant 0 : index
    %70 = vector.load %arg3[%69, %c0_25] : memref<16x128xf32, #tpu.memory_space<vmem>>, vector<1x128xf32>
    %71 = vector.shape_cast %70 : vector<1x128xf32> to vector<128xf32>
    %c4_26 = arith.constant 4 : index
    %c0_27 = arith.constant 0 : index
    %72 = vector.load %arg16[%c4_26, %c0_27] : memref<16x128xf32, #tpu.memory_space<vmem>>, vector<1x128xf32>
    %73 = vector.shape_cast %72 : vector<1x128xf32> to vector<128xf32>
    %74 = vector.shape_cast %71 : vector<128xf32> to vector<1x128xf32>
    tpu.vector_store %arg16[%c4_26, %c0_27], %74 {strides = array<i32>} : memref<16x128xf32, #tpu.memory_space<vmem>>, vector<1x128xf32>,
    %75 = arith.index_cast %arg0 : i32 to index
    %c4_28 = arith.constant 4 : index
    %76 = memref.load %arg2[%75, %c4_28] : memref<2x8xi32, #tpu.memory_space<smem>>
    %77 = arith.index_cast %76 : i32 to index
    %c0_29 = arith.constant 0 : index
    %78 = vector.load %arg14[%77, %c0_29] : memref<32x128xf32, #tpu.memory_space<vmem>>, vector<1x128xf32>
    %79 = vector.shape_cast %78 : vector<1x128xf32> to vector<128xf32>
    %c12 = arith.constant 12 : index
    %c0_30 = arith.constant 0 : index
    %80 = vector.load %arg16[%c12, %c0_30] : memref<16x128xf32, #tpu.memory_space<vmem>>, vector<1x128xf32>
    %81 = vector.shape_cast %80 : vector<1x128xf32> to vector<128xf32>
    %82 = vector.shape_cast %79 : vector<128xf32> to vector<1x128xf32>
    tpu.vector_store %arg16[%c12, %c0_30], %82 {strides = array<i32>} : memref<16x128xf32, #tpu.memory_space<vmem>>, vector<1x128xf32>,
    %83 = arith.index_cast %arg0 : i32 to index
    %c5 = arith.constant 5 : index
    %84 = memref.load %arg1[%83, %c5] : memref<2x8xi32, #tpu.memory_space<smem>>
    %85 = arith.index_cast %84 : i32 to index
    %c0_31 = arith.constant 0 : index
    %86 = vector.load %arg3[%85, %c0_31] : memref<16x128xf32, #tpu.memory_space<vmem>>, vector<1x128xf32>
    %87 = vector.shape_cast %86 : vector<1x128xf32> to vector<128xf32>
    %c5_32 = arith.constant 5 : index
    %c0_33 = arith.constant 0 : index
    %88 = vector.load %arg16[%c5_32, %c0_33] : memref<16x128xf32, #tpu.memory_space<vmem>>, vector<1x128xf32>
    %89 = vector.shape_cast %88 : vector<1x128xf32> to vector<128xf32>
    %90 = vector.shape_cast %87 : vector<128xf32> to vector<1x128xf32>
    tpu.vector_store %arg16[%c5_32, %c0_33], %90 {strides = array<i32>} : memref<16x128xf32, #tpu.memory_space<vmem>>, vector<1x128xf32>,
    %91 = arith.index_cast %arg0 : i32 to index
    %c5_34 = arith.constant 5 : index
    %92 = memref.load %arg2[%91, %c5_34] : memref<2x8xi32, #tpu.memory_space<smem>>
    %93 = arith.index_cast %92 : i32 to index
    %c0_35 = arith.constant 0 : index
    %94 = vector.load %arg14[%93, %c0_35] : memref<32x128xf32, #tpu.memory_space<vmem>>, vector<1x128xf32>
    %95 = vector.shape_cast %94 : vector<1x128xf32> to vector<128xf32>
    %c13 = arith.constant 13 : index
    %c0_36 = arith.constant 0 : index
    %96 = vector.load %arg16[%c13, %c0_36] : memref<16x128xf32, #tpu.memory_space<vmem>>, vector<1x128xf32>
    %97 = vector.shape_cast %96 : vector<1x128xf32> to vector<128xf32>
    %98 = vector.shape_cast %95 : vector<128xf32> to vector<1x128xf32>
    tpu.vector_store %arg16[%c13, %c0_36], %98 {strides = array<i32>} : memref<16x128xf32, #tpu.memory_space<vmem>>, vector<1x128xf32>,
    %99 = arith.index_cast %arg0 : i32 to index
    %c6 = arith.constant 6 : index
    %100 = memref.load %arg1[%99, %c6] : memref<2x8xi32, #tpu.memory_space<smem>>
    %101 = arith.index_cast %100 : i32 to index
    %c0_37 = arith.constant 0 : index
    %102 = vector.load %arg3[%101, %c0_37] : memref<16x128xf32, #tpu.memory_space<vmem>>, vector<1x128xf32>
    %103 = vector.shape_cast %102 : vector<1x128xf32> to vector<128xf32>
    %c6_38 = arith.constant 6 : index
    %c0_39 = arith.constant 0 : index
    %104 = vector.load %arg16[%c6_38, %c0_39] : memref<16x128xf32, #tpu.memory_space<vmem>>, vector<1x128xf32>
    %105 = vector.shape_cast %104 : vector<1x128xf32> to vector<128xf32>
    %106 = vector.shape_cast %103 : vector<128xf32> to vector<1x128xf32>
    tpu.vector_store %arg16[%c6_38, %c0_39], %106 {strides = array<i32>} : memref<16x128xf32, #tpu.memory_space<vmem>>, vector<1x128xf32>,
    %107 = arith.index_cast %arg0 : i32 to index
    %c6_40 = arith.constant 6 : index
    %108 = memref.load %arg2[%107, %c6_40] : memref<2x8xi32, #tpu.memory_space<smem>>
    %109 = arith.index_cast %108 : i32 to index
    %c0_41 = arith.constant 0 : index
    %110 = vector.load %arg14[%109, %c0_41] : memref<32x128xf32, #tpu.memory_space<vmem>>, vector<1x128xf32>
    %111 = vector.shape_cast %110 : vector<1x128xf32> to vector<128xf32>
    %c14 = arith.constant 14 : index
    %c0_42 = arith.constant 0 : index
    %112 = vector.load %arg16[%c14, %c0_42] : memref<16x128xf32, #tpu.memory_space<vmem>>, vector<1x128xf32>
    %113 = vector.shape_cast %112 : vector<1x128xf32> to vector<128xf32>
    %114 = vector.shape_cast %111 : vector<128xf32> to vector<1x128xf32>
    tpu.vector_store %arg16[%c14, %c0_42], %114 {strides = array<i32>} : memref<16x128xf32, #tpu.memory_space<vmem>>, vector<1x128xf32>,
    %115 = arith.index_cast %arg0 : i32 to index
    %c7 = arith.constant 7 : index
    %116 = memref.load %arg1[%115, %c7] : memref<2x8xi32, #tpu.memory_space<smem>>
    %117 = arith.index_cast %116 : i32 to index
    %c0_43 = arith.constant 0 : index
    %118 = vector.load %arg3[%117, %c0_43] : memref<16x128xf32, #tpu.memory_space<vmem>>, vector<1x128xf32>
    %119 = vector.shape_cast %118 : vector<1x128xf32> to vector<128xf32>
    %c7_44 = arith.constant 7 : index
    %c0_45 = arith.constant 0 : index
    %120 = vector.load %arg16[%c7_44, %c0_45] : memref<16x128xf32, #tpu.memory_space<vmem>>, vector<1x128xf32>
    %121 = vector.shape_cast %120 : vector<1x128xf32> to vector<128xf32>
    %122 = vector.shape_cast %119 : vector<128xf32> to vector<1x128xf32>
    tpu.vector_store %arg16[%c7_44, %c0_45], %122 {strides = array<i32>} : memref<16x128xf32, #tpu.memory_space<vmem>>, vector<1x128xf32>,
    %123 = arith.index_cast %arg0 : i32 to index
    %c7_46 = arith.constant 7 : index
    %124 = memref.load %arg2[%123, %c7_46] : memref<2x8xi32, #tpu.memory_space<smem>>
    %125 = arith.index_cast %124 : i32 to index
    %c0_47 = arith.constant 0 : index
    %126 = vector.load %arg14[%125, %c0_47] : memref<32x128xf32, #tpu.memory_space<vmem>>, vector<1x128xf32>
    %127 = vector.shape_cast %126 : vector<1x128xf32> to vector<128xf32>
    %c15 = arith.constant 15 : index
    %c0_48 = arith.constant 0 : index
    %128 = vector.load %arg16[%c15, %c0_48] : memref<16x128xf32, #tpu.memory_space<vmem>>, vector<1x128xf32>
    %129 = vector.shape_cast %128 : vector<1x128xf32> to vector<128xf32>
    %130 = vector.shape_cast %127 : vector<128xf32> to vector<1x128xf32>
    tpu.vector_store %arg16[%c15, %c0_48], %130 {strides = array<i32>} : memref<16x128xf32, #tpu.memory_space<vmem>>, vector<1x128xf32>,
    %c0_49 = arith.constant 0 : index
    %c0_50 = arith.constant 0 : index
    %131 = vector.load %arg16[%c0_49, %c0_50] : memref<16x128xf32, #tpu.memory_space<vmem>>, vector<16x128xf32>
    %c0_51 = arith.constant 0 : index
    %c0_52 = arith.constant 0 : index
    %c0_53 = arith.constant 0 : index
    %132 = vector.load %arg7[%c0_51, %c0_52, %c0_53] : memref<1x128x128xf32, #tpu.memory_space<vmem>>, vector<1x128x128xf32>
    %133 = vector.shape_cast %132 : vector<1x128x128xf32> to vector<128x128xf32>
    %cst = arith.constant dense<0.000000e+00> : vector<16x128xf32>
    %134 = tpu.matmul %131, %133, %cst {dimension_numbers = #tpu.dot_dimension_numbers<[1], [0], [0], [1], [0, 0, 1, 1], [], []>} : vector<16x128xf32>, vector<128x128xf32>, vector<16x128xf32> -> vector<16x128xf32>
    %c0_54 = arith.constant 0 : index
    %c0_55 = arith.constant 0 : index
    %c0_56 = arith.constant 0 : index
    %135 = vector.load %arg8[%c0_54, %c0_55, %c0_56] : memref<1x1x128xf32, #tpu.memory_space<vmem>>, vector<1x1x128xf32>
    %136 = vector.shape_cast %135 : vector<1x1x128xf32> to vector<1x128xf32>
    %137 = vector.broadcast %136 : vector<1x128xf32> to vector<16x128xf32>
    %138 = arith.addf %134, %137 : vector<16x128xf32>
    %139 = math.tanh %138 : vector<16x128xf32>
    %c0_57 = arith.constant 0 : index
    %c0_58 = arith.constant 0 : index
    %c0_59 = arith.constant 0 : index
    %140 = vector.load %arg9[%c0_57, %c0_58, %c0_59] : memref<1x1x128xf32, #tpu.memory_space<vmem>>, vector<1x1x128xf32>
    %141 = vector.shape_cast %140 : vector<1x1x128xf32> to vector<1x128xf32>
    %142 = vector.broadcast %141 : vector<1x128xf32> to vector<16x128xf32>
    %143 = arith.mulf %139, %142 : vector<16x128xf32>
    %cst_60 = arith.constant dense<0.000000e+00> : vector<16xf32>
    %144 = vector.multi_reduction <add>, %143, %cst_60 [1] : vector<16x128xf32> to vector<16xf32>
    %145 = vector.shape_cast %144 : vector<16xf32> to vector<16x1xf32>
    %c0_61 = arith.constant 0 : index
    %c0_62 = arith.constant 0 : index
    %c0_63 = arith.constant 0 : index
    %146 = vector.load %arg10[%c0_61, %c0_62, %c0_63] : memref<1x1x1xf32, #tpu.memory_space<vmem>>, vector<1x1x1xf32>
    %147 = vector.shape_cast %146 : vector<1x1x1xf32> to vector<1x1xf32>
    %148 = vector.broadcast %147 : vector<1x1xf32> to vector<16x1xf32>
    %149 = arith.addf %145, %148 : vector<16x1xf32>
    %150 = vector.extract_strided_slice %149 {offsets = [0, 0], sizes = [8, 1], strides = [1, 1]} : vector<16x1xf32> to vector<8x1xf32>
    %151 = vector.extract_strided_slice %149 {offsets = [8, 0], sizes = [8, 1], strides = [1, 1]} : vector<16x1xf32> to vector<8x1xf32>
    %152 = arith.maximumf %150, %151 : vector<8x1xf32>
    %153 = arith.subf %150, %152 : vector<8x1xf32>
    %154 = math.exp %153 : vector<8x1xf32>
    %155 = arith.subf %151, %152 : vector<8x1xf32>
    %156 = math.exp %155 : vector<8x1xf32>
    %157 = arith.addf %154, %156 : vector<8x1xf32>
    %cst_64 = arith.constant 1.000000e+00 : f32
    %158 = vector.broadcast %cst_64 : f32 to vector<8x1xf32>
    %159 = arith.divf %158, %157 : vector<8x1xf32>
    %160 = vector.extract_strided_slice %131 {offsets = [0, 0], sizes = [8, 128], strides = [1, 1]} : vector<16x128xf32> to vector<8x128xf32>
    %161 = arith.mulf %154, %159 : vector<8x1xf32>
    %162 = vector.broadcast %161 : vector<8x1xf32> to vector<8x128xf32>
    %163 = arith.mulf %160, %162 : vector<8x128xf32>
    %164 = vector.extract_strided_slice %131 {offsets = [8, 0], sizes = [8, 128], strides = [1, 1]} : vector<16x128xf32> to vector<8x128xf32>
    %165 = arith.mulf %156, %159 : vector<8x1xf32>
    %166 = vector.broadcast %165 : vector<8x1xf32> to vector<8x128xf32>
    %167 = arith.mulf %164, %166 : vector<8x128xf32>
    %168 = arith.addf %163, %167 : vector<8x128xf32>
    %c0_65 = arith.constant 0 : index
    %c0_66 = arith.constant 0 : index
    %c0_67 = arith.constant 0 : index
    %169 = vector.load %arg4[%c0_65, %c0_66, %c0_67] : memref<1x8x8xf32, #tpu.memory_space<vmem>>, vector<1x8x8xf32>
    %170 = vector.shape_cast %169 : vector<1x8x8xf32> to vector<8x8xf32>
    %c0_68 = arith.constant 0 : index
    %c0_69 = arith.constant 0 : index
    %c0_70 = arith.constant 0 : index
    %c0_71 = arith.constant 0 : index
    %171 = vector.load %arg11[%c0_68, %c0_69, %c0_70, %c0_71] : memref<1x2x128x128xf32, #tpu.memory_space<vmem>>, vector<1x1x128x128xf32>
    %172 = vector.shape_cast %171 : vector<1x1x128x128xf32> to vector<128x128xf32>
    %cst_72 = arith.constant dense<0.000000e+00> : vector<8x128xf32>
    %173 = tpu.matmul %168, %172, %cst_72 {dimension_numbers = #tpu.dot_dimension_numbers<[1], [0], [0], [1], [0, 0, 1, 1], [], []>} : vector<8x128xf32>, vector<128x128xf32>, vector<8x128xf32> -> vector<8x128xf32>
    %cst_73 = arith.constant dense<0.000000e+00> : vector<8x128xf32>
    %174 = tpu.matmul %170, %173, %cst_73 {dimension_numbers = #tpu.dot_dimension_numbers<[1], [0], [0], [1], [0, 0, 1, 1], [], []>} : vector<8x8xf32>, vector<8x128xf32>, vector<8x128xf32> -> vector<8x128xf32>
    %cst_74 = arith.constant 0.000000e+00 : f32
    %175 = vector.broadcast %cst_74 : f32 to vector<8x128xf32>
    %176 = arith.maximumf %174, %175 : vector<8x128xf32>
    %c0_75 = arith.constant 0 : index
    %c1_76 = arith.constant 1 : index
    %c0_77 = arith.constant 0 : index
    %c0_78 = arith.constant 0 : index
    %177 = vector.load %arg11[%c0_75, %c1_76, %c0_77, %c0_78] : memref<1x2x128x128xf32, #tpu.memory_space<vmem>>, vector<1x1x128x128xf32>
    %178 = vector.shape_cast %177 : vector<1x1x128x128xf32> to vector<128x128xf32>
    %cst_79 = arith.constant dense<0.000000e+00> : vector<8x128xf32>
    %179 = tpu.matmul %176, %178, %cst_79 {dimension_numbers = #tpu.dot_dimension_numbers<[1], [0], [0], [1], [0, 0, 1, 1], [], []>} : vector<8x128xf32>, vector<128x128xf32>, vector<8x128xf32> -> vector<8x128xf32>
    %cst_80 = arith.constant dense<0.000000e+00> : vector<8x128xf32>
    %180 = tpu.matmul %170, %179, %cst_80 {dimension_numbers = #tpu.dot_dimension_numbers<[1], [0], [0], [1], [0, 0, 1, 1], [], []>} : vector<8x8xf32>, vector<8x128xf32>, vector<8x128xf32> -> vector<8x128xf32>
    %cst_81 = arith.constant 0.000000e+00 : f32
    %181 = vector.broadcast %cst_81 : f32 to vector<8x128xf32>
    %182 = arith.maximumf %180, %181 : vector<8x128xf32>
    %c8_i32 = arith.constant 8 : i32
    %183 = arith.muli %arg0, %c8_i32 : i32
    %c16_i32 = arith.constant 16 : i32
    %184 = arith.addi %c16_i32, %183 : i32
    %185 = tpu.assume_multiple %184, 8 : i32
    %186 = arith.index_cast %185 : i32 to index
    %c0_82 = arith.constant 0 : index
    %187 = vector.load %arg14[%186, %c0_82] : memref<32x128xf32, #tpu.memory_space<vmem>>, vector<8x128xf32>
    tpu.vector_store %arg14[%186, %c0_82], %182 {strides = array<i32>} : memref<32x128xf32, #tpu.memory_space<vmem>>, vector<8x128xf32>,
    %c0_83 = arith.constant 0 : index
    %c0_84 = arith.constant 0 : index
    %c0_85 = arith.constant 0 : index
    %188 = vector.load %arg5[%c0_83, %c0_84, %c0_85] : memref<1x8x8xf32, #tpu.memory_space<vmem>>, vector<1x8x8xf32>
    %189 = vector.shape_cast %188 : vector<1x8x8xf32> to vector<8x8xf32>
    %cst_86 = arith.constant dense<0.000000e+00> : vector<8x128xf32>
    %190 = tpu.matmul %189, %182, %cst_86 {dimension_numbers = #tpu.dot_dimension_numbers<[1], [0], [0], [1], [0, 0, 1, 1], [], []>} : vector<8x8xf32>, vector<8x128xf32>, vector<8x128xf32> -> vector<8x128xf32>
    %cst_87 = arith.constant 0.000000e+00 : f32
    %191 = vector.broadcast %cst_87 : f32 to vector<8x128xf32>
    %192 = arith.maximumf %190, %191 : vector<8x128xf32>
    %c0_88 = arith.constant 0 : index
    %c0_89 = arith.constant 0 : index
    %c0_90 = arith.constant 0 : index
    %193 = vector.load %arg6[%c0_88, %c0_89, %c0_90] : memref<1x8x8xf32, #tpu.memory_space<vmem>>, vector<1x8x8xf32>
    %194 = vector.shape_cast %193 : vector<1x8x8xf32> to vector<8x8xf32>
    %c0_91 = arith.constant 0 : index
    %c0_92 = arith.constant 0 : index
    %c0_93 = arith.constant 0 : index
    %c0_94 = arith.constant 0 : index
    %195 = vector.load %arg12[%c0_91, %c0_92, %c0_93, %c0_94] : memref<1x2x128x128xf32, #tpu.memory_space<vmem>>, vector<1x1x128x128xf32>
    %196 = vector.shape_cast %195 : vector<1x1x128x128xf32> to vector<128x128xf32>
    %cst_95 = arith.constant dense<0.000000e+00> : vector<8x128xf32>
    %197 = tpu.matmul %192, %196, %cst_95 {dimension_numbers = #tpu.dot_dimension_numbers<[1], [0], [0], [1], [0, 0, 1, 1], [], []>} : vector<8x128xf32>, vector<128x128xf32>, vector<8x128xf32> -> vector<8x128xf32>
    %c0_96 = arith.constant 0 : index
    %c0_97 = arith.constant 0 : index
    %c0_98 = arith.constant 0 : index
    %c0_99 = arith.constant 0 : index
    %198 = vector.load %arg13[%c0_96, %c0_97, %c0_98, %c0_99] : memref<1x2x1x128xf32, #tpu.memory_space<vmem>>, vector<1x1x1x128xf32>
    %199 = vector.shape_cast %198 : vector<1x1x1x128xf32> to vector<1x128xf32>
    %200 = vector.broadcast %199 : vector<1x128xf32> to vector<8x128xf32>
    %201 = arith.addf %197, %200 : vector<8x128xf32>
    %cst_100 = arith.constant dense<0.000000e+00> : vector<8x128xf32>
    %202 = tpu.matmul %194, %201, %cst_100 {dimension_numbers = #tpu.dot_dimension_numbers<[1], [0], [0], [1], [0, 0, 1, 1], [], []>} : vector<8x8xf32>, vector<8x128xf32>, vector<8x128xf32> -> vector<8x128xf32>
    %203 = arith.addf %192, %202 : vector<8x128xf32>
    %c0_101 = arith.constant 0 : index
    %c1_102 = arith.constant 1 : index
    %c0_103 = arith.constant 0 : index
    %c0_104 = arith.constant 0 : index
    %204 = vector.load %arg12[%c0_101, %c1_102, %c0_103, %c0_104] : memref<1x2x128x128xf32, #tpu.memory_space<vmem>>, vector<1x1x128x128xf32>
    %205 = vector.shape_cast %204 : vector<1x1x128x128xf32> to vector<128x128xf32>
    %cst_105 = arith.constant dense<0.000000e+00> : vector<8x128xf32>
    %206 = tpu.matmul %202, %205, %cst_105 {dimension_numbers = #tpu.dot_dimension_numbers<[1], [0], [0], [1], [0, 0, 1, 1], [], []>} : vector<8x128xf32>, vector<128x128xf32>, vector<8x128xf32> -> vector<8x128xf32>
    %c0_106 = arith.constant 0 : index
    %c1_107 = arith.constant 1 : index
    %c0_108 = arith.constant 0 : index
    %c0_109 = arith.constant 0 : index
    %207 = vector.load %arg13[%c0_106, %c1_107, %c0_108, %c0_109] : memref<1x2x1x128xf32, #tpu.memory_space<vmem>>, vector<1x1x1x128xf32>
    %208 = vector.shape_cast %207 : vector<1x1x1x128xf32> to vector<1x128xf32>
    %209 = vector.broadcast %208 : vector<1x128xf32> to vector<8x128xf32>
    %210 = arith.addf %206, %209 : vector<8x128xf32>
    %cst_110 = arith.constant dense<0.000000e+00> : vector<8x128xf32>
    %211 = tpu.matmul %194, %210, %cst_110 {dimension_numbers = #tpu.dot_dimension_numbers<[1], [0], [0], [1], [0, 0, 1, 1], [], []>} : vector<8x8xf32>, vector<8x128xf32>, vector<8x128xf32> -> vector<8x128xf32>
    %212 = arith.addf %203, %211 : vector<8x128xf32>
    %c0_111 = arith.constant 0 : index
    %c0_112 = arith.constant 0 : index
    %c0_113 = arith.constant 0 : index
    %213 = vector.load %arg15[%c0_111, %c0_112, %c0_113] : memref<1x8x128xf32, #tpu.memory_space<vmem>>, vector<1x8x128xf32>
    %214 = vector.shape_cast %213 : vector<1x8x128xf32> to vector<8x128xf32>
    %215 = vector.shape_cast %212 : vector<8x128xf32> to vector<1x8x128xf32>
    tpu.vector_store %arg15[%c0_111, %c0_112, %c0_113], %215 {strides = array<i32>} : memref<1x8x128xf32, #tpu.memory_space<vmem>>, vector<1x8x128xf32>,
    return
  }
  func.func @transform_0(%arg0: i32, %arg1: memref<2x8xi32, #tpu.memory_space<smem>>, %arg2: memref<2x8xi32, #tpu.memory_space<smem>>) -> (i32, i32) {
    %c0_i32 = arith.constant 0 : i32
    %c0_i32_0 = arith.constant 0 : i32
    %c0_i32_1 = arith.constant 0 : i32
    return %c0_i32, %c0_i32_0 : i32, i32
  }
  func.func @transform_1(%arg0: i32, %arg1: memref<2x8xi32, #tpu.memory_space<smem>>, %arg2: memref<2x8xi32, #tpu.memory_space<smem>>) -> (i32, i32, i32) {
    %c0_i32 = arith.constant 0 : i32
    %c0_i32_0 = arith.constant 0 : i32
    %c0_i32_1 = arith.constant 0 : i32
    return %arg0, %c0_i32, %c0_i32_0 : i32, i32, i32
  }
  func.func @transform_2(%arg0: i32, %arg1: memref<2x8xi32, #tpu.memory_space<smem>>, %arg2: memref<2x8xi32, #tpu.memory_space<smem>>) -> (i32, i32, i32) {
    %c0_i32 = arith.constant 0 : i32
    %c0_i32_0 = arith.constant 0 : i32
    %c0_i32_1 = arith.constant 0 : i32
    return %arg0, %c0_i32, %c0_i32_0 : i32, i32, i32
  }
  func.func @transform_3(%arg0: i32, %arg1: memref<2x8xi32, #tpu.memory_space<smem>>, %arg2: memref<2x8xi32, #tpu.memory_space<smem>>) -> (i32, i32, i32) {
    %c0_i32 = arith.constant 0 : i32
    %c0_i32_0 = arith.constant 0 : i32
    %c0_i32_1 = arith.constant 0 : i32
    return %arg0, %c0_i32, %c0_i32_0 : i32, i32, i32
  }
  func.func @transform_4(%arg0: i32, %arg1: memref<2x8xi32, #tpu.memory_space<smem>>, %arg2: memref<2x8xi32, #tpu.memory_space<smem>>) -> (i32, i32, i32) {
    %c0_i32 = arith.constant 0 : i32
    %c0_i32_0 = arith.constant 0 : i32
    %c0_i32_1 = arith.constant 0 : i32
    return %arg0, %c0_i32, %c0_i32_0 : i32, i32, i32
  }
  func.func @transform_5(%arg0: i32, %arg1: memref<2x8xi32, #tpu.memory_space<smem>>, %arg2: memref<2x8xi32, #tpu.memory_space<smem>>) -> (i32, i32, i32) {
    %c0_i32 = arith.constant 0 : i32
    %c0_i32_0 = arith.constant 0 : i32
    %c0_i32_1 = arith.constant 0 : i32
    return %arg0, %c0_i32, %c0_i32_0 : i32, i32, i32
  }
  func.func @transform_6(%arg0: i32, %arg1: memref<2x8xi32, #tpu.memory_space<smem>>, %arg2: memref<2x8xi32, #tpu.memory_space<smem>>) -> (i32, i32, i32) {
    %c0_i32 = arith.constant 0 : i32
    %c0_i32_0 = arith.constant 0 : i32
    %c0_i32_1 = arith.constant 0 : i32
    return %arg0, %c0_i32, %c0_i32_0 : i32, i32, i32
  }
  func.func @transform_7(%arg0: i32, %arg1: memref<2x8xi32, #tpu.memory_space<smem>>, %arg2: memref<2x8xi32, #tpu.memory_space<smem>>) -> (i32, i32, i32) {
    %c0_i32 = arith.constant 0 : i32
    %c0_i32_0 = arith.constant 0 : i32
    %c0_i32_1 = arith.constant 0 : i32
    return %arg0, %c0_i32, %c0_i32_0 : i32, i32, i32
  }
  func.func @transform_8(%arg0: i32, %arg1: memref<2x8xi32, #tpu.memory_space<smem>>, %arg2: memref<2x8xi32, #tpu.memory_space<smem>>) -> (i32, i32, i32, i32) {
    %c0_i32 = arith.constant 0 : i32
    %c0_i32_0 = arith.constant 0 : i32
    %c0_i32_1 = arith.constant 0 : i32
    %c0_i32_2 = arith.constant 0 : i32
    return %arg0, %c0_i32, %c0_i32_0, %c0_i32_1 : i32, i32, i32, i32
  }
  func.func @transform_9(%arg0: i32, %arg1: memref<2x8xi32, #tpu.memory_space<smem>>, %arg2: memref<2x8xi32, #tpu.memory_space<smem>>) -> (i32, i32, i32, i32) {
    %c0_i32 = arith.constant 0 : i32
    %c0_i32_0 = arith.constant 0 : i32
    %c0_i32_1 = arith.constant 0 : i32
    %c0_i32_2 = arith.constant 0 : i32
    return %arg0, %c0_i32, %c0_i32_0, %c0_i32_1 : i32, i32, i32, i32
  }
  func.func @transform_10(%arg0: i32, %arg1: memref<2x8xi32, #tpu.memory_space<smem>>, %arg2: memref<2x8xi32, #tpu.memory_space<smem>>) -> (i32, i32, i32, i32) {
    %c0_i32 = arith.constant 0 : i32
    %c0_i32_0 = arith.constant 0 : i32
    %c0_i32_1 = arith.constant 0 : i32
    %c0_i32_2 = arith.constant 0 : i32
    return %arg0, %c0_i32, %c0_i32_0, %c0_i32_1 : i32, i32, i32, i32
  }
  func.func @transform_11(%arg0: i32, %arg1: memref<2x8xi32, #tpu.memory_space<smem>>, %arg2: memref<2x8xi32, #tpu.memory_space<smem>>) -> (i32, i32) {
    %c0_i32 = arith.constant 0 : i32
    %c0_i32_0 = arith.constant 0 : i32
    %c0_i32_1 = arith.constant 0 : i32
    return %c0_i32, %c0_i32_0 : i32, i32
  }
  func.func @transform_12(%arg0: i32, %arg1: memref<2x8xi32, #tpu.memory_space<smem>>, %arg2: memref<2x8xi32, #tpu.memory_space<smem>>) -> (i32, i32, i32) {
    %c0_i32 = arith.constant 0 : i32
    %c0_i32_0 = arith.constant 0 : i32
    %c0_i32_1 = arith.constant 0 : i32
    return %arg0, %c0_i32, %c0_i32_0 : i32, i32, i32
  }
}

</mosaic_0001>

<bundles_post_ra>
// kernel: structural_layer_forward.1
= control target key start
LH: loop header
LB: loop body
LE: loop exit
PB: predicated region body
PF: predicated region fallthrough
CT: control target
= control target key end

     0   :  { %s3481_s0 = inlined_call_operand.vmem [shape: s32[2,8], index: 0, kind: input, shape index: {}]   ;;  %s3482_s2 = inlined_call_operand.vmem [shape: f32[16,128], index: 2, kind: input, shape index: {}]   ;;  %s3483_s3 = inlined_call_operand.hbm [shape: f32[2,8,8], index: 3, kind: input, shape index: {}]   ;;  %s3484_s4 = inlined_call_operand.hbm [shape: f32[2,8,8], index: 4, kind: input, shape index: {}]   ;;  %s3485_s5 = inlined_call_operand.hbm [shape: f32[2,8,8], index: 5, kind: input, shape index: {}]   ;;  %s3486_s6 = inlined_call_operand.hbm [shape: f32[2,128,128], index: 6, kind: input, shape index: {}]   ;;  %s3487_s7 = inlined_call_operand.vmem [shape: f32[2,1,128], index: 7, kind: input, shape index: {}]   ;;  %s3488_s8 = inlined_call_operand.vmem [shape: f32[2,1,128], index: 8, kind: input, shape index: {}]   ;;  %s3489_s9 = inlined_call_operand.vmem [shape: f32[2,1,1], index: 9, kind: input, shape index: {}]   ;;  %s3490_s10 = inlined_call_operand.hbm [shape: f32[2,2,128,128], index: 10, kind: input, shape index: {}]   ;;  %s3491_s11 = inlined_call_operand.hbm [shape: f32[2,2,128,128], index: 11, kind: input, shape index: {}]   ;;  %s3492_s12 = inlined_call_operand.vmem [shape: f32[2,2,1,128], index: 12, kind: input, shape index: {}]   ;;  %s3493_s13 = inlined_call_operand.vmem [shape: f32[32,128], index: 13, kind: output, shape index: {0}]   ;;  %s3494_s14 = inlined_call_operand.vmem [shape: f32[2,8,128], index: 14, kind: output, shape index: {1}]   ;;  %s3495_s1 = inlined_call_operand.vmem [shape: s32[2,8], index: 1, kind: input, shape index: {}]  }
   0x1   :  { %3518 = sst [smem:[#allocation26_spill]] %s3482_s2  ;;  %s20_s15 = sshll.u32 %s3481_s0, 4  ;;  %s21_s15 = int_to_ptr.vmem [resolvable:$true] %s20_s15 }
   0x2   :  { %3519 = sst [smem:[#allocation27_spill]] %s3483_s3  ;;  %s24_s18 = sshll.u32 %s3495_s1, 4  ;;  %s25_s18 = int_to_ptr.vmem [resolvable:$true] %s24_s18 }
   0x3   :  { %3520 = sst [smem:[#allocation28_spill]] %s3484_s4  ;;  %s2474_s19 = scalar_lea.vmem %s21_s15, 32 }
   0x4   :  { %3521 = sst [smem:[#allocation29_spill]] %s3485_s5  ;;  %p2475_p0 = scmp.ne.s32.totalorder %s21_s15, %s2474_s19 }
   0x5   :  { %3522 = sst [smem:[#allocation30_spill]] %s3486_s6  ;;  %p2479_p1 = scmp.lt.s32.totalorder %s21_s15, %s21_s15 }
   0x6   :  { %3523 = sst [smem:[#allocation31_spill]] %s3490_s10  ;;  %p2480_p2 = scmp.lt.s32.totalorder %s2474_s19, %s2474_s19 }
   0x7   :  { %3524 = sst [smem:[#allocation32_spill]] %s3491_s11 }
   0x8   :  { %3525 = sst [smem:[#allocation33_spill]] %s3492_s12  ;;  %p2481_p3 = por %p2480_p2, %p2479_p1 }
   0x9   :  { %3526 = sst [smem:[#allocation34_spill]] %s3493_s13 }
   0xa   :  { %3527 = sst [smem:[#allocation35_spill]] %s3494_s14  ;;  %p2482_p4 = pnand %p2481_p3, %p2475_p0 }
   0xc   :  { %2485 = shalt.err (!%p2482_p4)  }
   0xd   :  { %s2728_s20 = smov [#allocation4]   ;;  %s2486_s21 = scalar_lea.vmem %s25_s18, 32 }
   0xe   :  { %23 = dma.vmem_to_smem %s21_s15, 32, %s2728_s20, [#allocation3] }
   0xf   :  { %p2487_p5 = scmp.ne.s32.totalorder %s25_s18, %s2486_s21  ;;  %p2491_p6 = scmp.lt.s32.totalorder %s25_s18, %s25_s18 }
  0x10   :  { %p2492_p7 = scmp.lt.s32.totalorder %s2486_s21, %s2486_s21 }
  0x12   :  { %p2493_p8 = por %p2492_p7, %p2491_p6 }
  0x14   :  { %p2494_p9 = pnand %p2493_p8, %p2487_p5 }
  0x16   :  { %2497 = shalt.err (!%p2494_p9)  }
  0x17   :  { %s2729_s0 = smov [#allocation5]  }
  0x18   :  { %27 = dma.vmem_to_smem %s25_s18, 32, %s2729_s0, [#allocation3] }
  0x19   :  { %2694 = dma.done.wait [#allocation3], 64 }
  0x1a   :  { %2695 = vsyncadd [#allocation3], 4294967232 }
  0x1b   :  { %29 = sfence }
  0x1c   :  { %30 = vsyncpa [#allocation7], 0 }
  0x1d   :  { %32 = vsyncpa [#allocation7 + $0x1], 0 }
  0x1e   :  { %33 = vsyncpa [#allocation9], 0 }
  0x1f   :  { %35 = vsyncpa [#allocation9 + $0x1], 0 }
  0x20   :  { %36 = vsyncpa [#allocation12], 0 }
  0x21   :  { %38 = vsyncpa [#allocation12 + $0x1], 0 }
  0x22   :  { %39 = vsyncpa [#allocation15], 0 }
  0x23   :  { %41 = vsyncpa [#allocation15 + $0x1], 0  ;;  %s2823_s1 = smov 0   ;;  %s2825_s22 = smov 0  }
  0x24   :  { %s2827_s23 = smov 0   ;;  %s2829_s24 = smov 0  }
  0x25 LB: > { %3528 = sst [smem:[#allocation21_spill]] %s2718_s22  ;;  %s2842_s25 = sadd.s32 4294967295, %s2726_s24   ;;  %s2726_s24 = sphi %s2829_s24, %s3570_s24   ;;  %s2722_s23 = sphi %s2827_s23, %s3573_s23   ;;  %s2718_s22 = sphi %s2825_s22, %s3572_s22   ;;  %s2714_s1 = sphi %s2823_s1, %s3571_s1  }
  0x26   : > { %3529 = sst [smem:[#allocation22_spill]] %s2722_s23  ;;  %s2845_s26 = sadd.s32 1, %s2726_s24  }
  0x27   : > { %3530 = sst [smem:[#allocation23_spill]] %s2845_s26  ;;  %s72_s27 = ssub.s32 %s2726_s24, %s2845_s26 }
  0x28   : > { %s75_s28 = sadd.s32 1, %s2722_s23  ;;  %p73_p10 = scmp.eq.s32.totalorder %s72_s27, 0 }
  0x29   : > { %p82_p11 = scmp.ne.s32.totalorder %s2722_s23, %s2718_s22  ;;  %p83_p12 = scmp.eq.s32.totalorder %s2726_s24, 0 }
  0x2a   : > { %p88_p13 = scmp.ne.s32.totalorder %s2718_s22, %s2714_s1  ;;  %p89_p1 = scmp.eq.s32.totalorder %s2842_s25, 0 }
  0x2b   : > { %s2855_s29 = scalar_select %p73_p10, %s2722_s23, %s75_s28  }
  0x2c   : > { %p84_p0 = por %p83_p12, %p82_p11  ;;  %p2421_p2 = scmp.lt.s32.totalorder %s2726_s24, 2 }
  0x2d   : > { %3531 = sst [smem:[#allocation24_spill]] %s2855_s29  ;;  %p2859_p3 = por %p89_p1, %p88_p13 }
  0x2e   : > { %s2864_s15 = sand.u32 1, %s2722_s23   ;;  %s2870_s17 = sshll.u32 %s2726_s24, 7 }
  0x2f   : > { %s3532_s30 = scalar_select %p2859_p3, 1, 0 }
  0x30   : > { %s2867_s16 = sshll.u32 %s2864_s15, 3  ;;  %p2872_p4 = pnand %p2421_p2, %p84_p0 }
  0x31   : > { %s3501_s19 = sand.u32 1, %s2726_s24   ;;  %s3534_s4 = sld [smem:[#allocation28_spill]] }
  0x32   : > { %s3533_s18 = scalar_select %p2872_p4, 1, 0 }
  0x33   : > { %s418_s1 = scalar_lea.vmem [#allocation8], %s2867_s16  ;;  %s2889_s28 = scalar_lea.sflag [#allocation9], %s3501_s19 }
  0x34   : > { %s425_s27 = sshll.u32 %s418_s1, 4  ;;  %p2895_p7 = pneg %p2872_p4  ;;  %s2884_s27 = int_to_ptr.vmem [resolvable:$true] %s425_s27 }
  0x37   : > { %s2881_s0 = scalar_lea.hbm %s3534_s4, %s2870_s17  ;;  %s2503_s1 = scalar_lea.hbm %s3534_s4, 256 }
  0x38   : > { %s2498_s29 = scalar_lea.hbm %s2881_s0, 128  ;;  %p2504_p10 = scmp.lt.u32.totalorder %s2881_s0, %s3534_s4 }
  0x39   : > { %p2499_p6 = scmp.ne.s32.totalorder %s2881_s0, %s2498_s29  ;;  %p2505_p11 = scmp.lt.u32.totalorder %s2503_s1, %s2498_s29 }
  0x3a   : > { %p2507_p13 = scmp.lt.u32.totalorder %s2498_s29, %s2881_s0 }
  0x3b   : > { %p2501_p8 = pnand %p2895_p7, %p2499_p6  ;;  %p2506_p12 = por %p2505_p11, %p2504_p10 }
  0x3d   : > { %p2502_p9 = pneg %p2501_p8  ;;  %p2508_p0 = por %p2507_p13, %p2506_p12 }
  0x3f   : > { %p2509_p1 = pnand %p2508_p0, %p2502_p9 }
  0x41   : > { %2512 = shalt.err (!%p2509_p1)
}
  0x42   : > { %s2513_s19 = scalar_lea.vmem %s2884_s27, 128  ;;  %s2730_s20 = smov [#allocation8]  }
  0x43   : > { %p2514_p2 = scmp.ne.s32.totalorder %s2884_s27, %s2513_s19  ;;  %s2518_s21 = sshll.u32 %s2730_s20, 4  ;;  %s2519_s21 = int_to_ptr.vmem [resolvable:$false] %s2518_s21 }
  0x44   : > { %s2520_s13 = scalar_lea.vmem %s2519_s21, 256  ;;  %p2521_p5 = scmp.lt.s32.totalorder %s2884_s27, %s2519_s21 }
  0x45   : > { %p2516_p6 = pnand %p2514_p2, %p2895_p7  ;;  %p2522_p3 = scmp.lt.s32.totalorder %s2520_s13, %s2513_s19 }
  0x47   : > { %p2517_p8 = pneg %p2516_p6  ;;  %p2523_p10 = por %p2522_p3, %p2521_p5 }
  0x49   : > { %p2524_p11 = pnand %p2523_p10, %p2517_p8 }
  0x4b   : > { %2527 = shalt.err (!%p2524_p11)
}
  0x4c   : > { %2408 = dma.hbm_to_vmem [thread:$0]  (!%p2872_p4), %s2881_s0, 128, %s2884_s27, %s2889_s28  }
  0x4d   : > { %p536_p9 = scmp.lt.s32.totalorder %s2726_s24, 3  ;;  %s1896_s26 = sshll.u32 %s2864_s15, 7 }
  0x4e   : > { %s1963_s29 = sshll.u32 %s2726_s24, 11  ;;  %p3536_p12 = scmp.ge.s32.totalorder %s2726_s24, 1 }
  0x4f   : > { %s3538_s6 = sld [smem:[#allocation30_spill]]  ;;  %s454_s13 = scalar_lea.vmem [#allocation11], %s1896_s26 }
  0x50   : > { %p2924_p13 = pnand %p3536_p12, %p536_p9  ;;  %s461_s4 = sshll.u32 %s454_s13, 4  ;;  %s2933_s4 = int_to_ptr.vmem [resolvable:$true] %s461_s4 }
  0x51   : > { %s3539_s0 = sand.u32 1, %s2726_s24  }
  0x52   : > { %s3537_s19 = scalar_select %p2924_p13, 1, 0 }
  0x53   : > { %s2937_s27 = scalar_lea.sflag [#allocation12], %s3539_s0 }
  0x55   : > { %s2931_s21 = scalar_lea.hbm %s3538_s6, %s1963_s29  ;;  %s2533_s29 = scalar_lea.hbm %s3538_s6, 4096 }
  0x56   : > { %s2528_s2 = scalar_lea.hbm %s2931_s21, 2048  ;;  %p2534_p1 = scmp.lt.u32.totalorder %s2931_s21, %s3538_s6 }
  0x57   : > { %p2529_p3 = scmp.ne.s32.totalorder %s2931_s21, %s2528_s2  ;;  %p2535_p2 = scmp.lt.u32.totalorder %s2533_s29, %s2528_s2 }
  0x58   : > { %p2537_p8 = scmp.lt.u32.totalorder %s2528_s2, %s2931_s21 }
  0x59   : > { %p2531_p5 = pnand %p2529_p3, %p2895_p7  ;;  %p2536_p6 = por %p2535_p2, %p2534_p1 }
  0x5b   : > { %p2532_p0 = pneg %p2531_p5  ;;  %p2538_p10 = por %p2537_p8, %p2536_p6 }
  0x5d   : > { %p2539_p11 = pnand %p2538_p10, %p2532_p0 }
  0x5f   : > { %2542 = shalt.err (!%p2539_p11)
}
  0x60   : > { %s2543_s26 = scalar_lea.vmem %s2933_s4, 2048  ;;  %s2731_s14 = smov [#allocation11]  }
  0x61   : > { %p2544_p9 = scmp.ne.s32.totalorder %s2933_s4, %s2543_s26  ;;  %s2548_s13 = sshll.u32 %s2731_s14, 4  ;;  %s2549_s13 = int_to_ptr.vmem [resolvable:$false] %s2548_s13 }
  0x62   : > { %s2550_s12 = scalar_lea.vmem %s2549_s13, 4096  ;;  %p2551_p5 = scmp.lt.s32.totalorder %s2933_s4, %s2549_s13 }
  0x63   : > { %p2546_p12 = pnand %p2544_p9, %p2895_p7  ;;  %p2552_p13 = scmp.lt.s32.totalorder %s2550_s12, %s2543_s26 }
  0x65   : > { %p2547_p3 = pneg %p2546_p12  ;;  %p2553_p1 = por %p2552_p13, %p2551_p5 }
  0x67   : > { %p2554_p2 = pnand %p2553_p1, %p2547_p3 }
  0x69   : > { %2557 = shalt.err (!%p2554_p2)
}
  0x6a   : > { %s3505_s2 = smov 128   ;;  %s3507_s0 = smov 8  }
  0x6b   : > { %2414 = dma.hbm_to_vmem [thread:$0]  (!%p2872_p4), %s2931_s21, 2048, %s2933_s4, %s2937_s27, %s3505_s2, %s3505_s2, %s3507_s0  }
  0x6c   : > { %s3540_s3 = sld [smem:[#allocation27_spill]]  ;;  %s400_s26 = scalar_lea.vmem [#allocation6], %s2867_s16 }
  0x6d   : > { %s407_s14 = sshll.u32 %s400_s26, 4  ;;  %s397_s13 = scalar_lea.sflag [#allocation7], %s2864_s15  ;;  %s408_s14 = int_to_ptr.vmem [resolvable:$true] %s407_s14 }
  0x72   : > { %s2968_s20 = scalar_lea.hbm %s3540_s3, %s2870_s17  ;;  %s2563_s21 = scalar_lea.hbm %s3540_s3, 256 }
  0x73   : > { %s2558_s12 = scalar_lea.hbm %s2968_s20, 128  ;;  %p2564_p8 = scmp.lt.u32.totalorder %s2968_s20, %s3540_s3 }
  0x74   : > { %p2559_p13 = scmp.ne.s32.totalorder %s2968_s20, %s2558_s12  ;;  %p2565_p10 = scmp.lt.u32.totalorder %s2563_s21, %s2558_s12 }
  0x75   : > { %p2567_p9 = scmp.lt.u32.totalorder %s2558_s12, %s2968_s20 }
  0x76   : > { %p2561_p0 = pnand %p2559_p13, %p2895_p7  ;;  %p2566_p11 = por %p2565_p10, %p2564_p8 }
  0x78   : > { %p2562_p6 = pneg %p2561_p0  ;;  %p2568_p12 = por %p2567_p9, %p2566_p11 }
  0x7a   : > { %p2569_p3 = pnand %p2568_p12, %p2562_p6 }
  0x7c   : > { %2572 = shalt.err (!%p2569_p3)
}
  0x7d   : > { %s2573_s26 = scalar_lea.vmem %s408_s14, 128  ;;  %s2734_s2 = smov [#allocation6]  }
  0x7e   : > { %p2574_p5 = scmp.ne.s32.totalorder %s408_s14, %s2573_s26  ;;  %s2578_s0 = sshll.u32 %s2734_s2, 4  ;;  %s2579_s0 = int_to_ptr.vmem [resolvable:$false] %s2578_s0 }
  0x7f   : > { %s2580_s6 = scalar_lea.vmem %s2579_s0, 256  ;;  %p2581_p13 = scmp.lt.s32.totalorder %s408_s14, %s2579_s0 }
  0x80   : > { %p2576_p1 = pnand %p2574_p5, %p2895_p7  ;;  %p2582_p0 = scmp.lt.s32.totalorder %s2580_s6, %s2573_s26 }
  0x82   : > { %p2577_p2 = pneg %p2576_p1  ;;  %p2583_p4 = por %p2582_p0, %p2581_p13 }
  0x84   : > { %p2584_p8 = pnand %p2583_p4, %p2577_p2 }
  0x86   : > { %2587 = shalt.err (!%p2584_p8)
}
  0x87   : > { %p3541_p10 = scmp.ne.s32.totalorder %s3533_s18, 0  ;;  %s3542_s5 = sld [smem:[#allocation29_spill]] }
  0x88   : > { %s436_s2 = scalar_lea.vmem [#allocation10], %s2867_s16  ;;  %s1899_s1 = sshll.u32 %s2864_s15, 8 }
  0x89   : > { %2405 = dma.hbm_to_vmem [thread:$0]  (!%p3541_p10), %s2968_s20, 128, %s408_s14, %s397_s13  }
  0x8a   : > { %s443_s0 = sshll.u32 %s436_s2, 4  ;;  %s444_s0 = int_to_ptr.vmem [resolvable:$true] %s443_s0 }
  0x8d   : > { %s2993_s21 = scalar_lea.hbm %s3542_s5, %s2870_s17  ;;  %s2593_s14 = scalar_lea.hbm %s3542_s5, 256 }
  0x8e   : > { %s2588_s29 = scalar_lea.hbm %s2993_s21, 128  ;;  %p2594_p9 = scmp.lt.u32.totalorder %s2993_s21, %s3542_s5 }
  0x8f   : > { %p2589_p4 = scmp.ne.s32.totalorder %s2993_s21, %s2588_s29  ;;  %p2595_p12 = scmp.lt.u32.totalorder %s2593_s14, %s2588_s29 }
  0x90   : > { %p2597_p5 = scmp.lt.u32.totalorder %s2588_s29, %s2993_s21 }
  0x91   : > { %p2591_p6 = pnand %p2589_p4, %p2895_p7  ;;  %p2596_p3 = por %p2595_p12, %p2594_p9 }
  0x93   : > { %p2592_p11 = pneg %p2591_p6  ;;  %p2598_p1 = por %p2597_p5, %p2596_p3 }
  0x95   : > { %p2599_p2 = pnand %p2598_p1, %p2592_p11 }
  0x97   : > { %2602 = shalt.err (!%p2599_p2)
}
  0x98   : > { %s2603_s16 = scalar_lea.vmem %s444_s0, 128  ;;  %s2735_s6 = smov [#allocation10]  }
  0x99   : > { %p2604_p13 = scmp.ne.s32.totalorder %s444_s0, %s2603_s16  ;;  %s2608_s12 = sshll.u32 %s2735_s6, 4  ;;  %s2609_s12 = int_to_ptr.vmem [resolvable:$false] %s2608_s12 }
  0x9a   : > { %s2610_s4 = scalar_lea.vmem %s2609_s12, 256  ;;  %p2611_p4 = scmp.lt.s32.totalorder %s444_s0, %s2609_s12 }
  0x9b   : > { %p2606_p0 = pnand %p2604_p13, %p2895_p7  ;;  %p2612_p6 = scmp.lt.s32.totalorder %s2610_s4, %s2603_s16 }
  0x9d   : > { %p2607_p8 = pneg %p2606_p0  ;;  %p2613_p10 = por %p2612_p6, %p2611_p4 }
  0x9f   : > { %p2614_p9 = pnand %p2613_p10, %p2607_p8 }
  0xa1   : > { %2617 = shalt.err (!%p2614_p9)
}
  0xa2   : > { %p3543_p12 = scmp.ne.s32.totalorder %s3533_s18, 0  ;;  %s1964_s2 = sshll.u32 %s2726_s24, 12 }
  0xa3   : > { %s3544_s10 = sld [smem:[#allocation31_spill]]  ;;  %s493_s14 = scalar_lea.vmem [#allocation13], %s1899_s1 }
  0xa4   : > { %2411 = dma.hbm_to_vmem [thread:$0]  (!%p3543_p12), %s2993_s21, 128, %s444_s0, %s2889_s28  }
  0xa5   : > { %s500_s13 = sshll.u32 %s493_s14, 4  ;;  %s3025_s13 = int_to_ptr.vmem [resolvable:$true] %s500_s13 }
  0xa9   : > { %s3021_s20 = scalar_lea.hbm %s3544_s10, %s1964_s2  ;;  %s2623_s0 = scalar_lea.hbm %s3544_s10, 8192 }
  0xaa   : > { %s2618_s17 = scalar_lea.hbm %s3021_s20, 4096  ;;  %p2624_p5 = scmp.lt.u32.totalorder %s3021_s20, %s3544_s10 }
  0xab   : > { %p2619_p10 = scmp.ne.s32.totalorder %s3021_s20, %s2618_s17  ;;  %p2625_p1 = scmp.lt.u32.totalorder %s2623_s0, %s2618_s17 }
  0xac   : > { %p2627_p13 = scmp.lt.u32.totalorder %s2618_s17, %s3021_s20 }
  0xad   : > { %p2621_p11 = pnand %p2619_p10, %p2895_p7  ;;  %p2626_p2 = por %p2625_p1, %p2624_p5 }
  0xaf   : > { %p2622_p3 = pneg %p2621_p11  ;;  %p2628_p0 = por %p2627_p13, %p2626_p2 }
  0xb1   : > { %p2629_p8 = pnand %p2628_p0, %p2622_p3 }
  0xb3   : > { %2632 = shalt.err (!%p2629_p8)
}
  0xb4   : > { %s2633_s12 = scalar_lea.vmem %s3025_s13, 4096  ;;  %s2736_s4 = smov [#allocation13]  }
  0xb5   : > { %p2634_p4 = scmp.ne.s32.totalorder %s3025_s13, %s2633_s12  ;;  %s2638_s29 = sshll.u32 %s2736_s4, 4  ;;  %s2639_s29 = int_to_ptr.vmem [resolvable:$false] %s2638_s29 }
  0xb6   : > { %s2640_s26 = scalar_lea.vmem %s2639_s29, 8192  ;;  %p2641_p10 = scmp.lt.s32.totalorder %s3025_s13, %s2639_s29 }
  0xb7   : > { %p2636_p6 = pnand %p2634_p4, %p2895_p7  ;;  %p2642_p11 = scmp.lt.s32.totalorder %s2640_s26, %s2633_s12 }
  0xb9   : > { %p2637_p9 = pneg %p2636_p6  ;;  %p2643_p5 = por %p2642_p11, %p2641_p10 }
  0xbb   : > { %p2644_p1 = pnand %p2643_p5, %p2637_p9 }
  0xbd   : > { %2647 = shalt.err (!%p2644_p1)
}
  0xbe   : > { %s3545_s14 = smov 8   ;;  %s3546_s17 = smov 128  }
  0xbf   : > { %2417 = dma.hbm_to_vmem [thread:$0]  (!%p3543_p12), %s3021_s20, 4096, %s3025_s13, %s2937_s27, %s3546_s17, %s3546_s17, %s3545_s14  }
  0xc0   : > { %s3547_s11 = sld [smem:[#allocation32_spill]]  ;;  %s514_s16 = scalar_lea.vmem [#allocation14], %s1899_s1 }
  0xc1   : > { %s521_s6 = sshll.u32 %s514_s16, 4  ;;  %s511_s12 = scalar_lea.sflag [#allocation15], %s2864_s15  ;;  %s3061_s6 = int_to_ptr.vmem [resolvable:$true] %s521_s6 }
  0xc6   : > { %s3057_s0 = scalar_lea.hbm %s3547_s11, %s1964_s2  ;;  %s2653_s2 = scalar_lea.hbm %s3547_s11, 8192 }
  0xc7   : > { %s2648_s4 = scalar_lea.hbm %s3057_s0, 4096  ;;  %p2654_p0 = scmp.lt.u32.totalorder %s3057_s0, %s3547_s11 }
  0xc8   : > { %p2649_p3 = scmp.ne.s32.totalorder %s3057_s0, %s2648_s4  ;;  %p2655_p8 = scmp.lt.u32.totalorder %s2653_s2, %s2648_s4 }
  0xc9   : > { %p2657_p6 = scmp.lt.u32.totalorder %s2648_s4, %s3057_s0 }
  0xca   : > { %p2651_p2 = pnand %p2649_p3, %p2895_p7  ;;  %p2656_p4 = por %p2655_p8, %p2654_p0 }
  0xcc   : > { %p2652_p13 = pneg %p2651_p2  ;;  %p2658_p9 = por %p2657_p6, %p2656_p4 }
  0xce   : > { %p2659_p10 = pnand %p2658_p9, %p2652_p13 }
  0xd0   : > { %2662 = shalt.err (!%p2659_p10)
}
  0xd1   : > { %s2663_s1 = scalar_lea.vmem %s3061_s6, 4096  ;;  %s2737_s29 = smov [#allocation14]  }
  0xd2   : > { %p2664_p11 = scmp.ne.s32.totalorder %s3061_s6, %s2663_s1  ;;  %s2668_s26 = sshll.u32 %s2737_s29, 4  ;;  %s2669_s26 = int_to_ptr.vmem [resolvable:$false] %s2668_s26 }
  0xd3   : > { %s2670_s28 = scalar_lea.vmem %s2669_s26, 8192  ;;  %p2671_p3 = scmp.lt.s32.totalorder %s3061_s6, %s2669_s26 }
  0xd4   : > { %p2666_p5 = pnand %p2664_p11, %p2895_p7  ;;  %p2672_p2 = scmp.lt.s32.totalorder %s2670_s28, %s2663_s1 }
  0xd6   : > { %p2667_p1 = pneg %p2666_p5  ;;  %p2673_p0 = por %p2672_p2, %p2671_p3 }
  0xd8   : > { %p2674_p8 = pnand %p2673_p0, %p2667_p1 }
  0xda   : > { %2677 = shalt.err (!%p2674_p8)
}
  0xdb   : > { %2420 = dma.hbm_to_vmem [thread:$0]  (!%p3543_p12), %s3057_s0, 4096, %s3061_s6, %s511_s12, %s3546_s17, %s3546_s17, %s3545_s14  }
  0xdc   : > { %p3548_p7 = scmp.ne.s32.totalorder %s3537_s19, 0 }
  0xde   : > { %540 = sbr.rel (%p3548_p7) target bundleno = 2763 (0xacb), region = 64 }
  0xe5   : > { %s542_s23 = sand.u32 1, %s2718_s22   ;;  %p3549_p13 = scmp.ne.s32.totalorder %s3532_s30, 0 }
  0xe6   : > { %s3093_s21 = sshll.u32 %s542_s23, 3  ;;  %s543_s16 = scalar_lea.sflag [#allocation7], %s542_s23 }
  0xe7   : > { %2697 = dma.done.wait (%p3549_p13), %s543_s16, 128  }
  0xe8   : > { %2699 = vsyncadd (%p3549_p13), %s543_s16, 4294967168  ;;  %s551_s15 = sand.u32 1, %s2842_s25  }
  0xe9   : > { %s552_s18 = scalar_lea.sflag [#allocation9], %s551_s15 }
  0xea   : > { %2701 = dma.done.wait (%p3549_p13), %s552_s18, 256  }
  0xeb   : > { %2703 = vsyncadd (%p3549_p13), %s552_s18, 4294967040  ;;  %s1909_s14 = sshll.u32 %s542_s23, 7  ;;  %s570_s0 = scalar_lea.sflag [#allocation12], %s551_s15 }
  0xec   : > { %s3107_s6 = scalar_lea.vmem [#allocation11], %s1909_s14 }
  0xed   : > { %2705 = dma.done.wait (%p3549_p13), %s570_s0, 6144  }
  0xee   : > { %2707 = vsyncadd (%p3549_p13), %s570_s0, 4294961152  ;;  %s1910_s12 = sshll.u32 %s542_s23, 8  ;;  %s588_s27 = scalar_lea.sflag [#allocation15], %s542_s23 }
  0xef   : > { %s3113_s24 = scalar_lea.vmem [#allocation13], %s1910_s12  ;;  %s3115_s2 = scalar_lea.vmem [#allocation14], %s1910_s12 }
  0xf0   : > { %2709 = dma.done.wait (%p3549_p13), %s588_s27, 4096  }
  0xf1   : > { %2711 = vsyncadd (%p3549_p13), %s588_s27, 4294963200  ;;  %p669_p12 = scmp.lt.s32.totalorder %s2842_s25, 1  ;;  %s3550_s12 = sld [smem:[#allocation33_spill]] }
  0xf2   : > { %s3551_s19 = sld [smem:[#allocation35_spill]]  ;;  %p1914_p4 = scmp.ne.s32.totalorder %s2842_s25, 0 }
  0xf3   : > { %s3123_s20 = scalar_select %p669_p12, %s2842_s25, 1 }
  0xf4   : > { %689 = sbr.rel (%p1914_p4) target bundleno = 253 (0xfd), region = 92  ;;  %s3553_s23 = sld [smem:[#allocation26_spill]] (!%p1914_p4) }
  0xf5   : > { %s1912_s18 = sshll.u32 %s3123_s20, 1  ;;  %s1913_s13 = sshll.u32 %s3123_s20, 3 }
  0xf6   : > { %s3554_s0 = sld [smem:[#allocation34_spill]] (!%p1914_p4) }
  0xf7   : > { %s3141_s27 = scalar_lea.vmem %s3550_s12, %s1912_s18 }
  0xf8   : > { %s3147_s4 = scalar_lea.vmem %s3551_s19, %s1913_s13 }
  0xf9   : > { %3552 = sst [smem:[#allocation25_spill]] %s3147_s4 }
  0xfa   : > { %v690_v0 = vld [vmem:[%s3553_s23] sm:$0xff] (!%p1914_p4)  ;;  %v691_v1 = vld [vmem:[%s3553_s23 + $0x8] sm:$0xff] (!%p1914_p4) }
  0xfc   : > { %692 = vst [vmem:[%s3554_s0] sm:$0xff] %v690_v0  ;;  %693 = vst [vmem:[%s3554_s0 + $0x8] sm:$0xff] %v691_v1 }
  0xfd PF: > { %v768_v2 = vld [vmem:[%s3107_s6] sm:$0xff]  ;;  %v769_v3 = vld [vmem:[%s3107_s6 + $0x8] sm:$0xff]  ;;  %v770_v4 = vld [vmem:[%s3107_s6 + $0x10] sm:$0xff]  ;;  %s3166_s19 = sshll.u32 %s2842_s25, 7  ;;  %s3561_s11 = sld [smem:[#allocation34_spill]]  ;;  %v2738_v54 = vmov 0  }
  0xfe   : > { %v2262_v5 = vpack.c.bf16 %v769_v3, %v768_v2  ;;  %v771_v6 = vld [vmem:[%s3107_s6 + $0x18] sm:$0xff]  ;;  %s695_s17 = sld [smem:[#allocation4 + %s3166_s19]]  ;;  %s3513_s23 = sadd.s32 1, %s3166_s19  ;;  %v772_v8 = vld [vmem:[%s3107_s6 + $0x20] sm:$0xff]  ;;  %v773_v9 = vld [vmem:[%s3107_s6 + $0x28] sm:$0xff]  ;;  %2462 = vset.pattern.permute.xlu1 %v2738_v54  ;;  %2463 = vset.pattern.permute.xlu0 %v2738_v54  ;;  %v2739_v58 = vmov 0.0|0.0  }
  0xff   : > { %v2266_v7 = vpack.c.bf16 %v771_v6, %v770_v4  ;;  %s704_s15 = sld [smem:[#allocation4 + %s3513_s23]]  ;;  %s3512_s13 = sadd.s32 2, %s3166_s19  ;;  %v2270_v10 = vpack.c.bf16 %v773_v9, %v772_v8  ;;  %v774_v11 = vld [vmem:[%s3107_s6 + $0x30] sm:$0xff]  ;;  %v775_v12 = vld [vmem:[%s3107_s6 + $0x38] sm:$0xff]  ;;  %v776_v16 = vld [vmem:[%s3107_s6 + $0x40] sm:$0xff]  ;;  %2294 = vmatprep.subr.bf16.mxu1 %v2739_v58  ;;  %vm2740_vm0 = vmmov 0  }
 0x100   : > { %2263 = vmatprep.subr.bf16.mxu0 %v2262_v5  ;;  %s713_s1 = sld [smem:[#allocation4 + %s3512_s13]]  ;;  %s3511_s26 = sadd.s32 3, %s3166_s19  ;;  %v2274_v14 = vpack.c.bf16 %v775_v12, %v774_v11  ;;  %v777_v17 = vld [vmem:[%s3107_s6 + $0x48] sm:$0xff]  ;;  %v778_v23 = vld [vmem:[%s3107_s6 + $0x50] sm:$0xff]  ;;  %v779_v24 = vld [vmem:[%s3107_s6 + $0x58] sm:$0xff]  ;;  %vm1002_vm1 = vcmask 64512  }
 0x101   : > { %2265 = vmatpush3.bf16.msra.mxu0 %v2262_v5  ;;  %s3181_s28 = sld [smem:[#allocation4 + %s3511_s26]]  ;;  %s3514_s30 = sadd.s32 4, %s3166_s19  ;;  %v2278_v21 = vpack.c.bf16 %v777_v17, %v776_v16  ;;  %v2282_v27 = vpack.c.bf16 %v779_v24, %v778_v23  ;;  %v780_v29 = vld [vmem:[%s3107_s6 + $0x60] sm:$0xff]  ;;  %v781_v30 = vld [vmem:[%s3107_s6 + $0x68] sm:$0xff]  ;;  %v782_v37 = vld [vmem:[%s3107_s6 + $0x70] sm:$0xff] }
 0x102   : > { %2267 = vmatprep.subr.bf16.mxu0 %v2266_v7  ;;  %s3186_s16 = sld [smem:[#allocation4 + %s3514_s30]]  ;;  %s739_s14 = sadd.s32 5, %s3166_s19  ;;  %v2286_v34 = vpack.c.bf16 %v781_v30, %v780_v29  ;;  %v783_v38 = vld [vmem:[%s3107_s6 + $0x78] sm:$0xff]  ;;  %v916_v55 = vld [vmem:[%s3113_s24] sm:$0xff]  ;;  %v917_v56 = vld [vmem:[%s3113_s24 + $0x8] sm:$0xff] }
 0x103   : > { %s3193_s18 = sld [smem:[#allocation4 + %s739_s14]]  ;;  %s3515_s0 = sadd.s32 6, %s3166_s19  ;;  %v2290_v42 = vpack.c.bf16 %v783_v38, %v782_v37  ;;  %v918_v57 = vld [vmem:[%s3113_s24 + $0x10] sm:$0xff]  ;;  %v2295_v59 = vpack.c.bf16 %v917_v56, %v916_v55  ;;  %v919_v60 = vld [vmem:[%s3113_s24 + $0x18] sm:$0xff]  ;;  %v920_v62 = vld [vmem:[%s3113_s24 + $0x20] sm:$0xff] }
 0x104   : > { %s3555_s26 = sld [smem:[#allocation26_spill]]  ;;  %s3516_s10 = sadd.s32 7, %s3166_s19  ;;  %v2298_v61 = vpack.c.bf16 %v919_v60, %v918_v57  ;;  %v921_v63 = vld [vmem:[%s3113_s24 + $0x28] sm:$0xff]  ;;  %v922_v1 = vld [vmem:[%s3113_s24 + $0x30] sm:$0xff]  ;;  %v923_v2 = vld [vmem:[%s3113_s24 + $0x38] sm:$0xff] }
 0x105   : > { %s3201_s23 = sld [smem:[#allocation4 + %s3515_s0]]  ;;  %2269 = vmatpush3.bf16.msra.mxu0 %v2266_v7  ;;  %s3562_s22 = sadd.s32 7, %s3166_s19  ;;  %2296 = vmatpush3.bf16.msra.mxu1 %v2295_v59  ;;  %v2301_v0 = vpack.c.bf16 %v921_v63, %v920_v62  ;;  %v2304_v3 = vpack.c.bf16 %v923_v2, %v922_v1  ;;  %v924_v4 = vld [vmem:[%s3113_s24 + $0x40] sm:$0xff]  ;;  %v925_v5 = vld [vmem:[%s3113_s24 + $0x48] sm:$0xff]  ;;  %v926_v7 = vld [vmem:[%s3113_s24 + $0x50] sm:$0xff] }
 0x106   : > { %2271 = vmatprep.subr.bf16.mxu0 %v2270_v10  ;;  %s3212_s0 = sld [smem:[#allocation4 + %s3516_s10]]  ;;  %2297 = vmatprep.subr.bf16.mxu1 %v2739_v58  ;;  %v2307_v6 = vpack.c.bf16 %v925_v5, %v924_v4  ;;  %v927_v8 = vld [vmem:[%s3113_s24 + $0x58] sm:$0xff]  ;;  %v930_v29 = vld [vmem:[%s3113_s24 + $0x70] sm:$0xff]  ;;  %v1920_v38 = vld [vmem:[%s3113_s24 + $0x80] sm:$0xff] }
 0x107   : > { %s3271_s4 = sld [smem:[#allocation5 + %s3562_s22]]  ;;  %v2310_v9 = vpack.c.bf16 %v927_v8, %v926_v7  ;;  %v931_v30 = vld [vmem:[%s3113_s24 + $0x78] sm:$0xff]  ;;  %v1932_v56 = vld [vmem:[%s3113_s24 + $0xe0] sm:$0xff]  ;;  %v1933_v57 = vld [vmem:[%s3113_s24 + $0xe8] sm:$0xff] }
 0x108   : > { %v1931_v54 = vld [vmem:[%s3113_s24 + $0xd8] sm:$0xff]  ;;  %v2337_v59 = vpack.c.bf16 %v1933_v57, %v1932_v56  ;;  %v1934_v63 = vld [vmem:[%s3113_s24 + $0xf0] sm:$0xff]  ;;  %v1315_v7 = vld [vmem:[%s3115_s2] sm:$0xff] }
 0x109   : > { %2273 = vmatpush3.bf16.msra.mxu0 %v2270_v10  ;;  %2299 = vmatpush3.bf16.msra.mxu1 %v2298_v61  ;;  %v1316_v8 = vld [vmem:[%s3115_s2 + $0x8] sm:$0xff]  ;;  %v1954_v57 = vld [vmem:[%s3115_s2 + $0xe0] sm:$0xff] }
 0x10a   : > { %s696_s13 = scalar_lea.vmem %s3555_s26, %s695_s17  ;;  %s705_s5 = scalar_lea.vmem %s3555_s26, %s704_s15  ;;  %2275 = vmatprep.subr.bf16.mxu0 %v2274_v14  ;;  %2300 = vmatprep.subr.bf16.mxu1 %v2739_v58 }
 0x10b   : > { %v697_v13 = vld [vmem:[%s696_s13] sm:$0x1]  ;;  %s714_s12 = scalar_lea.vmem %s3555_s26, %s713_s1  ;;  %s723_s13 = scalar_lea.vmem %s3555_s26, %s3181_s28 }
 0x10c   : > { %698 = vst [vmem:[#allocation2] sm:$0x1] %v697_v13  ;;  %v706_v15 = vld [vmem:[%s705_s5] sm:$0x1]  ;;  %s3221_s5 = sld [smem:[#allocation5 + %s3166_s19]]  ;;  %s732_s29 = scalar_lea.vmem %s3555_s26, %s3186_s16 }
 0x10d   : > { %707 = vst [vmem:[#allocation2 + $0x1] sm:$0x1] %v706_v15  ;;  %v715_v18 = vld [vmem:[%s714_s12] sm:$0x1]  ;;  %s3556_s17 = sadd.s32 1, %s3166_s19  ;;  %s741_s3 = scalar_lea.vmem %s3555_s26, %s3193_s18  ;;  %2277 = vmatpush3.bf16.msra.mxu0 %v2274_v14  ;;  %2302 = vmatpush3.bf16.msra.mxu1 %v2301_v0  ;;  %v1935_v0 = vld [vmem:[%s3113_s24 + $0xf8] sm:$0xff] }
 0x10e   : > { %716 = vst [vmem:[#allocation2 + $0x2] sm:$0x1] %v715_v18  ;;  %v724_v19 = vld [vmem:[%s723_s13] sm:$0x1]  ;;  %s3229_s10 = sld [smem:[#allocation5 + %s3556_s17]]  ;;  %s3557_s15 = sadd.s32 2, %s3166_s19  ;;  %2279 = vmatprep.subr.bf16.mxu0 %v2278_v21  ;;  %2303 = vmatprep.subr.bf16.mxu1 %v2739_v58  ;;  %v2340_v1 = vpack.c.bf16 %v1935_v0, %v1934_v63 }
 0x10f   : > { %725 = vst [vmem:[#allocation2 + $0x3] sm:$0x1] %v724_v19  ;;  %v733_v20 = vld [vmem:[%s732_s29] sm:$0x1]  ;;  %s3237_s13 = sld [smem:[#allocation5 + %s3557_s15]]  ;;  %s750_s30 = scalar_lea.vmem %s3555_s26, %s3201_s23 }
 0x110   : > { %734 = vst [vmem:[#allocation2 + $0x4] sm:$0x1] %v733_v20  ;;  %v742_v22 = vld [vmem:[%s741_s3] sm:$0x1]  ;;  %s3558_s29 = sadd.s32 3, %s3166_s19  ;;  %s3559_s18 = sadd.s32 4, %s3166_s19 }
 0x111   : > { %s3245_s17 = sld [smem:[#allocation5 + %s3558_s29]]  ;;  %743 = vst [vmem:[#allocation2 + $0x5] sm:$0x1] %v742_v22  ;;  %v751_v25 = vld [vmem:[%s750_s30] sm:$0x1]  ;;  %s759_s23 = scalar_lea.vmem %s3555_s26, %s3212_s0  ;;  %2281 = vmatpush3.bf16.msra.mxu0 %v2278_v21  ;;  %2305 = vmatpush3.bf16.msra.mxu1 %v2304_v3 }
 0x112   : > { %s3251_s28 = sld [smem:[#allocation5 + %s3559_s18]]  ;;  %752 = vst [vmem:[#allocation2 + $0x6] sm:$0x1] %v751_v25  ;;  %s3560_s16 = sadd.s32 6, %s3166_s19  ;;  %v760_v26 = vld [vmem:[%s759_s23] sm:$0x1]  ;;  %2283 = vmatprep.subr.bf16.mxu0 %v2282_v27  ;;  %2306 = vmatprep.subr.bf16.mxu1 %v2739_v58 }
 0x113   : > { %s3255_s12 = sld [smem:[#allocation5 + %s739_s14]]  ;;  %s700_s18 = scalar_lea.vmem %s3561_s11, %s3221_s5  ;;  %761 = vst [vmem:[#allocation2 + $0x7] sm:$0x1] %v760_v26  ;;  %v928_v25 = vld [vmem:[%s3113_s24 + $0x60] sm:$0xff]  ;;  %v929_v26 = vld [vmem:[%s3113_s24 + $0x68] sm:$0xff] }
 0x114   : > { %s3263_s1 = sld [smem:[#allocation5 + %s3560_s16]]  ;;  %v701_v28 = vld [vmem:[%s700_s18] sm:$0x1]  ;;  %s709_s0 = scalar_lea.vmem %s3561_s11, %s3229_s10 }
 0x115   : > { %702 = vst [vmem:[#allocation2 + $0x8] sm:$0x1] %v701_v28  ;;  %v710_v31 = vld [vmem:[%s709_s0] sm:$0x1]  ;;  %s718_s22 = scalar_lea.vmem %s3561_s11, %s3237_s13  ;;  %s763_s3 = scalar_lea.vmem %s3561_s11, %s3271_s4  ;;  %2285 = vmatpush3.bf16.msra.mxu0 %v2282_v27  ;;  %2308 = vmatpush3.bf16.msra.mxu1 %v2307_v6  ;;  %v2313_v27 = vpack.c.bf16 %v929_v26, %v928_v25  ;;  %v1325_v26 = vld [vmem:[%s3115_s2 + $0x50] sm:$0xff] }
 0x116   : > { %711 = vst [vmem:[#allocation2 + $0x9] sm:$0x1] %v710_v31  ;;  %v719_v32 = vld [vmem:[%s718_s22] sm:$0x1]  ;;  %2287 = vmatprep.subr.bf16.mxu0 %v2286_v34  ;;  %s3564_s22 = scalar_lea.vmem %s3488_s8, %s3123_s20  ;;  %2309 = vmatprep.subr.bf16.mxu1 %v2739_v58  ;;  %v2316_v31 = vpack.c.bf16 %v931_v30, %v930_v29  ;;  %s3567_s29 = scalar_lea.vmem [#allocation8], %s3093_s21  ;;  %v1328_v30 = vld [vmem:[%s3115_s2 + $0x68] sm:$0xff] }
 0x117   : > { %s727_s23 = scalar_lea.vmem %s3561_s11, %s3245_s17  ;;  %720 = vst [vmem:[#allocation2 + $0xa] sm:$0x1] %v719_v32  ;;  %v764_v40 = vld [vmem:[%s763_s3] sm:$0x1]  ;;  %v2741_v32 = vmov 0.0  }
 0x118   : > { %v728_v33 = vld [vmem:[%s727_s23] sm:$0x1]  ;;  %s736_s30 = scalar_lea.vmem %s3561_s11, %s3251_s28  ;;  %765 = vst [vmem:[#allocation2 + $0xf] sm:$0x1] %v764_v40  ;;  %s3565_s23 = scalar_lea.vmem %s3489_s9, %s3123_s20  ;;  %2129 = vmatprep.mubr.msk.f32.mxu1 %vm2740_vm0, %v2741_v32  ;;  %v1922_v40 = vld [vmem:[%s3113_s24 + $0x90] sm:$0xff] }
 0x119   : > { %s745_s26 = scalar_lea.vmem %s3561_s11, %s3255_s12  ;;  %729 = vst [vmem:[#allocation2 + $0xb] sm:$0x1] %v728_v33  ;;  %v737_v35 = vld [vmem:[%s736_s30] sm:$0x1]  ;;  %2289 = vmatpush3.bf16.msra.mxu0 %v2286_v34  ;;  %s3563_s12 = scalar_lea.vmem %s3487_s7, %s3123_s20  ;;  %2311 = vmatpush3.bf16.msra.mxu1 %v2310_v9 }
 0x11a   : > { %v746_v36 = vld [vmem:[%s745_s26] sm:$0x1]  ;;  %s754_s17 = scalar_lea.vmem %s3561_s11, %s3263_s1  ;;  %738 = vst [vmem:[#allocation2 + $0xc] sm:$0x1] %v737_v35  ;;  %2291 = vmatprep.subr.bf16.mxu0 %v2290_v42  ;;  %2312 = vmatprep.subr.bf16.mxu1 %v2739_v58  ;;  %s3566_s20 = scalar_lea.vmem [#allocation6], %s3093_s21 }
 0x11b   : > { %747 = vst [vmem:[#allocation2 + $0xd] sm:$0x1] %v746_v36  ;;  %v755_v39 = vld [vmem:[%s754_s17] sm:$0x1]  ;;  %v915_v60 = vld [vmem:[%s3566_s20] sm:$0xff] }
 0x11c   : > { %756 = vst [vmem:[#allocation2 + $0xe] sm:$0x1] %v755_v39  ;;  %v3305_v41 = vld [vmem:[#allocation2] sm:$0xff]  ;;  %v1921_v39 = vld [vmem:[%s3113_s24 + $0x88] sm:$0xff] }
 0x11d   : > { %2094 = vmatprep.mubr.f32.mxu0 %v3305_v41  ;;  %2293 = vmatpush3.bf16.msra.mxu0 %v2290_v42  ;;  %v1916_v44 = vld [vmem:[%s3563_s12] ss:$0 sm:$0xff]  ;;  %v2319_v42 = vpack.c.bf16 %v1921_v39, %v1920_v38 }
 0x11e   : > { %v1917_v49 = vld [vmem:[%s3564_s22] ss:$0 sm:$0xff]  ;;  %2314 = vmatpush3.bf16.msra.mxu1 %v2313_v27  ;;  %2132 = vmatprep.subr.mxu0 %v2741_v32  ;;  %v1326_v27 = vld [vmem:[%s3115_s2 + $0x58] sm:$0xff] }
 0x11f   : > { %v1918_v11 = vld [vmem:[%s3565_s23] ss:$0 sm:$0xff]  ;;  %2315 = vmatprep.subr.bf16.mxu1 %v2739_v58 }
 0x120   : > { %v1327_v29 = vld [vmem:[%s3115_s2 + $0x60] sm:$0xff] }
 0x121   : > { %v1942_v39 = vld [vmem:[%s3115_s2 + $0x80] sm:$0xff] }
 0x122   : > { %2317 = vmatpush3.bf16.msra.mxu1 %v2316_v31  ;;  %v2361_v31 = vpack.c.bf16 %v1328_v30, %v1327_v29  ;;  %v1940_v0 = vld [vmem:[%s3141_s27] ss:$0 sm:$0xff] }
 0x123   : > { %v3308_v43 = vld [vmem:[#allocation2 + $0x8] sm:$0xff]  ;;  %2318 = vmatprep.subr.bf16.mxu1 %v2739_v58 }
 0x124   : > { %2095 = vmatmul.mubr.f32.vlgmr.msra.gmra.mrb[0].mxu0 %v3308_v43 }
 0x125   : > { %2134 = vmatprep.mubr.msk.f32.mxu0 %vm2740_vm0, %v2741_v32 }
 0x1f7   : > { %v2096_v45 = vpop.f32.mrb[0].mxu0 }
 0x1f8   : > { %v857_v46 = vpop.f32.mrb[1].mxu0  ;;  %v863_v47 = vadd.f32 %v2096_v45, %v1916_v44 }
 0x1f9   : > { %v858_v48 = vadd.f32 %v1916_v44, %v857_v46  ;;  %v1923_v44 = vld [vmem:[%s3113_s24 + $0x98] sm:$0xff] }
 0x1fa   : > { %v2322_v45 = vpack.c.bf16 %v1923_v44, %v1922_v40  ;;  %v1943_v40 = vld [vmem:[%s3115_s2 + $0x88] sm:$0xff] }
 0x1fb   : > { %2464 = vtanh.f32 %v858_v48  ;;  %v1927_v48 = vld [vmem:[%s3113_s24 + $0xb8] sm:$0xff]  ;;  %v2367_v44 = vpack.c.bf16 %v1943_v40, %v1942_v39 }
 0x1fc   : > { %2466 = vtanh.f32 %v863_v47  ;;  %v1926_v47 = vld [vmem:[%s3113_s24 + $0xb0] sm:$0xff] }
 0x205   : > { %v2465_v50 = vpop.eup %2464 }
 0x206   : > { %v875_v51 = vmul.f32 %v2465_v50, %v1917_v49  ;;  %v2467_v52 = vpop.eup %2466  ;;  %v1928_v50 = vld [vmem:[%s3113_s24 + $0xc0] sm:$0xff] }
 0x207   : > { %v876_v53 = vmul.f32 %v2467_v52, %v1917_v49  ;;  %v2328_v49 = vpack.c.bf16 %v1927_v48, %v1926_v47  ;;  %v1948_v48 = vld [vmem:[%s3115_s2 + $0xb0] sm:$0xff] }
 0x208   : > { %877 = vadd.xlane.f32.xlu0 %v875_v51  ;;  %v1929_v51 = vld [vmem:[%s3113_s24 + $0xc8] sm:$0xff] }
 0x209   : > { %v2331_v52 = vpack.c.bf16 %v1929_v51, %v1928_v50  ;;  %v1950_v51 = vld [vmem:[%s3115_s2 + $0xc0] sm:$0xff] }
 0x20c   : > { %879 = vadd.xlane.f32.xlu0 %v876_v53  ;;  %v1930_v53 = vld [vmem:[%s3113_s24 + $0xd0] sm:$0xff] }
 0x20d   : > { %v2334_v55 = vpack.c.bf16 %v1931_v54, %v1930_v53  ;;  %v1952_v54 = vld [vmem:[%s3115_s2 + $0xd0] sm:$0xff] }
 0x295   : > { %v878_v10 = vpop.xlane.xlu0 %877 }
 0x296   : > { %v888_v13 = vadd.f32 %v1918_v11, %v878_v10 }
 0x299   : > { %v880_v12 = vpop.xlane.xlu0 %879 }
 0x29a   : > { %v889_v14 = vadd.f32 %v1918_v11, %v880_v12  ;;  %v1239_v12 = vld [vmem:[%s3567_s29] sm:$0xff] }
 0x29c   : > { %v890_v15 = vmax.f32 %v888_v13, %v889_v14 }
 0x29e   : > { %v891_v16 = vsub.f32 %v888_v13, %v890_v15  ;;  %v894_v17 = vsub.f32 %v889_v14, %v890_v15  ;;  %v2343_v13 = vpack.c.bf16 %v1316_v8, %v1315_v7  ;;  %v1317_v14 = vld [vmem:[%s3115_s2 + $0x10] sm:$0xff]  ;;  %v1318_v15 = vld [vmem:[%s3115_s2 + $0x18] sm:$0xff] }
 0x2a0   : > { %v892_v18 = vmul.f32 1.442695, %v891_v16  ;;  %v895_v19 = vmul.f32 1.442695, %v894_v17  ;;  %v2346_v16 = vpack.c.bf16 %v1318_v15, %v1317_v14  ;;  %v1319_v17 = vld [vmem:[%s3115_s2 + $0x20] sm:$0xff] }
 0x2a2   : > { %2468 = vpow2.f32 %v892_v18  ;;  %v1320_v18 = vld [vmem:[%s3115_s2 + $0x28] sm:$0xff] }
 0x2a3   : > { %2470 = vpow2.f32 %v895_v19  ;;  %v2349_v19 = vpack.c.bf16 %v1320_v18, %v1319_v17 }
 0x2ac   : > { %v2469_v20 = vpop.eup %2468 }
 0x2ad   : > { %v2471_v21 = vpop.eup %2470 }
 0x2ae   : > { %v897_v22 = vadd.f32 %v2471_v21, %v2469_v20 }
 0x2b0   : > { %2472 = vrcp.f32 %v897_v22 }
 0x2ba   : > { %v2473_v23 = vpop.eup %2472 }
 0x2bb   : > { %v900_v24 = vmul.f32 %v2473_v23, %v2469_v20  ;;  %v907_v28 = vmul.f32 %v2473_v23, %v2471_v21  ;;  %v1321_v20 = vld [vmem:[%s3115_s2 + $0x30] sm:$0xff]  ;;  %v1322_v21 = vld [vmem:[%s3115_s2 + $0x38] sm:$0xff]  ;;  %v1323_v23 = vld [vmem:[%s3115_s2 + $0x40] sm:$0xff] }
 0x2bc   : > { %v2352_v22 = vpack.c.bf16 %v1322_v21, %v1321_v20 }
 0x2bd   : > { %903 = vperm.xlu1 %2462, %v900_v24   ;;  %v1324_v24 = vld [vmem:[%s3115_s2 + $0x48] sm:$0xff] }
 0x2be   : > { %v2355_v25 = vpack.c.bf16 %v1324_v24, %v1323_v23 }
 0x2c1   : > { %910 = vperm.xlu1 %2462, %v907_v28   ;;  %v2358_v28 = vpack.c.bf16 %v1326_v27, %v1325_v26 }
 0x33c   : > { %v904_v33 = vpop.permute.xlu1 %903 }
 0x33d   : > { %v906_v35 = vmul.f32 %v904_v33, %v3305_v41  ;;  %v1924_v41 = vld [vmem:[%s3113_s24 + $0xa0] sm:$0xff]  ;;  %v1329_v33 = vld [vmem:[%s3115_s2 + $0x70] sm:$0xff] }
 0x340   : > { %v911_v34 = vpop.permute.xlu1 %910 }
 0x341   : > { %v913_v36 = vmul.f32 %v911_v34, %v3308_v43  ;;  %v1925_v43 = vld [vmem:[%s3113_s24 + $0xa8] sm:$0xff]  ;;  %s1937_s24 = sshll.u32 %s2842_s25, 3  ;;  %v1330_v34 = vld [vmem:[%s3115_s2 + $0x78] sm:$0xff]  ;;  %s3569_s25 = sld [smem:[#allocation25_spill]] }
 0x342   : > { %v2325_v46 = vpack.c.bf16 %v1925_v43, %v1924_v41  ;;  %s1788_s30 = scalar_lea.vmem %s3561_s11, %s1937_s24  ;;  %v1946_v43 = vld [vmem:[%s3115_s2 + $0xa0] sm:$0xff]  ;;  %s3568_s11 = scalar_lea.vmem [#allocation10], %s3093_s21 }
 0x343   : > { %v914_v37 = vadd.f32 %v913_v36, %v906_v35  ;;  %v2364_v35 = vpack.c.bf16 %v1330_v34, %v1329_v33 }
 0x345   : > { %2130 = vmatmul.mubr.f32.vlgmr.msra.gmra.mrb[0].mxu1 %v914_v37 }
 0x346   : > { %2169 = vmatprep.mubr.msk.f32.mxu1 %vm2740_vm0, %v2741_v32  ;;  %2320 = vmatpush3.bf16.msra.mxu1 %v2319_v42  ;;  %v1944_v42 = vld [vmem:[%s3115_s2 + $0x90] sm:$0xff] }
 0x347   : > { %2321 = vmatprep.subr.bf16.mxu1 %v2739_v58 }
 0x34a   : > { %2323 = vmatpush3.bf16.msra.mxu1 %v2322_v45  ;;  %v1945_v45 = vld [vmem:[%s3115_s2 + $0x98] sm:$0xff] }
 0x34b   : > { %2324 = vmatprep.subr.bf16.mxu1 %v2739_v58  ;;  %v2370_v41 = vpack.c.bf16 %v1945_v45, %v1944_v42 }
 0x34e   : > { %2326 = vmatpush3.bf16.msra.mxu1 %v2325_v46  ;;  %v1947_v46 = vld [vmem:[%s3115_s2 + $0xa8] sm:$0xff] }
 0x34f   : > { %2327 = vmatprep.subr.bf16.mxu1 %v2739_v58  ;;  %v2373_v47 = vpack.c.bf16 %v1947_v46, %v1946_v43 }
 0x352   : > { %2329 = vmatpush3.bf16.msra.mxu1 %v2328_v49  ;;  %v1949_v49 = vld [vmem:[%s3115_s2 + $0xb8] sm:$0xff] }
 0x353   : > { %2330 = vmatprep.subr.bf16.mxu1 %v2739_v58  ;;  %v2376_v50 = vpack.c.bf16 %v1949_v49, %v1948_v48 }
 0x356   : > { %2332 = vmatpush3.bf16.msra.mxu1 %v2331_v52  ;;  %v1951_v52 = vld [vmem:[%s3115_s2 + $0xc8] sm:$0xff] }
 0x357   : > { %2333 = vmatprep.subr.bf16.mxu1 %v2739_v58  ;;  %v2379_v53 = vpack.c.bf16 %v1951_v52, %v1950_v51 }
 0x35a   : > { %2335 = vmatpush3.bf16.msra.mxu1 %v2334_v55  ;;  %v1953_v55 = vld [vmem:[%s3115_s2 + $0xd8] sm:$0xff] }
 0x35b   : > { %2336 = vmatprep.subr.bf16.mxu1 %v2739_v58  ;;  %v2382_v56 = vpack.c.bf16 %v1953_v55, %v1952_v54 }
 0x35e   : > { %2338 = vmatpush3.bf16.msra.mxu1 %v2337_v59  ;;  %v1955_v59 = vld [vmem:[%s3115_s2 + $0xe8] sm:$0xff] }
 0x35f   : > { %2339 = vmatprep.subr.bf16.mxu1 %v2739_v58 }
 0x362   : > { %2341 = vmatpush3.bf16.msra.mxu1 %v2340_v1 }
 0x363   : > { %2366 = vmatprep.subr.bf16.mxu1 %v2739_v58 }
 0x418   : > { %v998_v61 = vpop.f32.mrb[0].mxu1 }
 0x419   : > { %v2131_v62 = vpop.f32.mrb[1].mxu1  ;;  %2133 = vmatpush3.msra.mxu0 %v998_v61  ;;  %v1956_v61 = vld [vmem:[%s3115_s2 + $0xf0] sm:$0xff] }
 0x41a   : > { %2135 = vmatmul.mubr.msk.f32.vlgmr.msra.gmra.mrb[2].mxu0 %vm1002_vm1, %v915_v60  ;;  %2172 = vmatprep.subr.mxu0 %v2741_v32  ;;  %v1957_v62 = vld [vmem:[%s3115_s2 + $0xf8] sm:$0xff] }
 0x41b   : > { %2174 = vmatprep.mubr.msk.f32.mxu0 %vm2740_vm0, %v2741_v32  ;;  %v2388_v63 = vpack.c.bf16 %v1957_v62, %v1956_v61 }
 0x4ed   : > { %v1072_v2 = vpop.f32.mrb[2].mxu0 }
 0x4ee   : > { %v1076_v3 = vmax.f32 %v1072_v2, 0.0  ;;  %v2136_v4 = vpop.f32.mrb[3].mxu0 }
 0x4ef   : > { %v1314_v4 = vld [vmem:[%s3568_s11] sm:$0xff] }
 0x4f0   : > { %2170 = vmatmul.mubr.f32.vlgmr.msra.gmra.mrb[2].mxu1 %v1076_v3 }
 0x4f1   : > { %2254 = vmatprep.mubr.msk.f32.mxu1 %vm2740_vm0, %v2741_v32  ;;  %2368 = vmatpush3.bf16.msra.mxu1 %v2367_v44 }
 0x4f2   : > { %2369 = vmatprep.subr.bf16.mxu1 %v2739_v58 }
 0x4f5   : > { %2371 = vmatpush3.bf16.msra.mxu1 %v2370_v41 }
 0x4f6   : > { %2372 = vmatprep.subr.bf16.mxu1 %v2739_v58 }
 0x4f9   : > { %2374 = vmatpush3.bf16.msra.mxu1 %v2373_v47 }
 0x4fa   : > { %2375 = vmatprep.subr.bf16.mxu1 %v2739_v58 }
 0x4fd   : > { %2377 = vmatpush3.bf16.msra.mxu1 %v2376_v50 }
 0x4fe   : > { %2378 = vmatprep.subr.bf16.mxu1 %v2739_v58 }
 0x501   : > { %2380 = vmatpush3.bf16.msra.mxu1 %v2379_v53 }
 0x502   : > { %2381 = vmatprep.subr.bf16.mxu1 %v2739_v58 }
 0x505   : > { %2383 = vmatpush3.bf16.msra.mxu1 %v2382_v56 }
 0x506   : > { %2384 = vmatprep.subr.bf16.mxu1 %v2739_v58 }
 0x5c3   : > { %v1160_v5 = vpop.f32.mrb[2].mxu1 }
 0x5c4   : > { %v2171_v6 = vpop.f32.mrb[3].mxu1  ;;  %2173 = vmatpush3.msra.mxu0 %v1160_v5 }
 0x5c5   : > { %2175 = vmatmul.mubr.msk.f32.vlgmr.msra.gmra.mrb[4].mxu0 %vm1002_vm1, %v915_v60  ;;  %2177 = vmatprep.subr.mxu0 %v2741_v32  ;;  %v2385_v60 = vpack.c.bf16 %v1955_v59, %v1954_v57 }
 0x5c6   : > { %2179 = vmatprep.mubr.msk.f32.mxu0 %vm2740_vm0, %v2741_v32 }
 0x5c7   : > { %2386 = vmatpush3.bf16.msra.mxu1 %v2385_v60 }
 0x5c8   : > { %2387 = vmatprep.subr.bf16.mxu1 %v2739_v58 }
 0x5cb   : > { %2389 = vmatpush3.bf16.msra.mxu1 %v2388_v63 }
 0x698   : > { %v1230_v9 = vpop.f32.mrb[4].mxu0 }
 0x699   : > { %v1234_v10 = vmax.f32 %v1230_v9, 0.0  ;;  %v2176_v11 = vpop.f32.mrb[5].mxu0 }
 0x69b   : > { %1938 = vst [vmem:[%s1788_s30 + $0x10] sm:$0xff] %v1234_v10  ;;  %2178 = vmatpush3.msra.mxu0 %v1234_v10 }
 0x69c   : > { %2180 = vmatmul.mubr.msk.f32.vlgmr.msra.gmra.mrb[6].mxu0 %vm1002_vm1, %v1239_v12  ;;  %2342 = vmatprep.subr.bf16.mxu0 %v2739_v58 }
 0x69d   : > { %2344 = vmatpush3.bf16.msra.mxu0 %v2343_v13  ;;  %2214 = vmatprep.mubr.msk.f32.mxu0 %vm2740_vm0, %v2741_v32 }
 0x69e   : > { %2345 = vmatprep.subr.bf16.mxu0 %v2739_v58 }
 0x6a1   : > { %2347 = vmatpush3.bf16.msra.mxu0 %v2346_v16 }
 0x6a2   : > { %2348 = vmatprep.subr.bf16.mxu0 %v2739_v58 }
 0x6a5   : > { %2350 = vmatpush3.bf16.msra.mxu0 %v2349_v19 }
 0x6a6   : > { %2351 = vmatprep.subr.bf16.mxu0 %v2739_v58 }
 0x6a9   : > { %2353 = vmatpush3.bf16.msra.mxu0 %v2352_v22 }
 0x6aa   : > { %2354 = vmatprep.subr.bf16.mxu0 %v2739_v58 }
 0x6ad   : > { %2356 = vmatpush3.bf16.msra.mxu0 %v2355_v25 }
 0x6ae   : > { %2357 = vmatprep.subr.bf16.mxu0 %v2739_v58 }
 0x6b1   : > { %2359 = vmatpush3.bf16.msra.mxu0 %v2358_v28 }
 0x6b2   : > { %2360 = vmatprep.subr.bf16.mxu0 %v2739_v58 }
 0x6b5   : > { %2362 = vmatpush3.bf16.msra.mxu0 %v2361_v31 }
 0x6b6   : > { %2363 = vmatprep.subr.bf16.mxu0 %v2739_v58  ;;  %v1959_v58 = vld [vmem:[%s3141_s27 + $0x1] ss:$0 sm:$0xff] }
 0x6b9   : > { %2365 = vmatpush3.bf16.msra.mxu0 %v2364_v35 }
 0x6ba   : > { %2217 = vmatprep.subr.mxu0 %v2741_v32 }
 0x76f   : > { %v3430_v36 = vpop.f32.mrb[6].mxu0 }
 0x770   : > { %v1313_v37 = vmax.f32 %v3430_v36, 0.0  ;;  %v2181_v38 = vpop.f32.mrb[7].mxu0 }
 0x772   : > { %2215 = vmatmul.mubr.f32.vlgmr.msra.gmra.mrb[8].mxu0 %v1313_v37 }
 0x773   : > { %2219 = vmatprep.mubr.msk.f32.mxu0 %vm2740_vm0, %v2741_v32 }
 0x845   : > { %v1404_v1 = vpop.f32.mrb[8].mxu0 }
 0x846   : > { %v1405_v2 = vadd.f32 %v1940_v0, %v1404_v1  ;;  %v2216_v3 = vpop.f32.mrb[9].mxu0 }
 0x848   : > { %2218 = vmatpush3.msra.mxu0 %v1405_v2 }
 0x849   : > { %2220 = vmatmul.mubr.msk.f32.vlgmr.msra.gmra.mrb[10].mxu0 %vm1002_vm1, %v1314_v4  ;;  %2257 = vmatprep.subr.mxu0 %v2741_v32 }
 0x84a   : > { %2259 = vmatprep.mubr.msk.f32.mxu0 %vm2740_vm0, %v2741_v32 }
 0x91c   : > { %v1477_v5 = vpop.f32.mrb[10].mxu0 }
 0x91d   : > { %v2221_v6 = vpop.f32.mrb[11].mxu0  ;;  %2255 = vmatmul.mubr.f32.vlgmr.msra.gmra.mrb[4].mxu1 %v1477_v5  ;;  %v1481_v10 = vadd.f32 %v1477_v5, %v1313_v37 }
 0x9f0   : > { %v1573_v7 = vpop.f32.mrb[4].mxu1 }
 0x9f1   : > { %v1574_v8 = vadd.f32 %v1959_v58, %v1573_v7  ;;  %v2256_v9 = vpop.f32.mrb[5].mxu1 }
 0x9f3   : > { %2258 = vmatpush3.msra.mxu0 %v1574_v8 }
 0x9f4   : > { %2260 = vmatmul.mubr.msk.f32.vlgmr.msra.gmra.mrb[12].mxu0 %vm1002_vm1, %v1314_v4 }
 0xac7   : > { %v1643_v11 = vpop.f32.mrb[12].mxu0 }
 0xac8   : > { %v1647_v12 = vadd.f32 %v1643_v11, %v1481_v10  ;;  %v2261_v13 = vpop.f32.mrb[13].mxu0 }
 0xaca   : > { %1648 = vst [vmem:[%s3569_s25] sm:$0xff] %v1647_v12 }
 0xacb PF: > { %s3570_s24 = sld [smem:[#allocation23_spill]]  ;;  %s3571_s1 = sld [smem:[#allocation21_spill]] }
 0xacc   : > { %s3572_s22 = sld [smem:[#allocation22_spill]]  ;;  %s3573_s23 = sld [smem:[#allocation24_spill]] }
 0xad1   : > { %p44_p6 = scmp.ge.s32.totalorder %s3570_s24, 4  }
 0xad3   :  { %46 = sbr.rel (!%p44_p6) target bundleno = 37 (0x25), region = 209 }
 0xada   :  { %1674 = vsyncpa [#allocation7], 1 }
 0xadb   :  { %1676 = vsyncpa [#allocation7 + $0x1], 1 }
 0xadc   :  { %1677 = vsyncpa [#allocation9], 1 }
 0xadd   :  { %1679 = vsyncpa [#allocation9 + $0x1], 1 }
 0xade   :  { %1680 = vsyncpa [#allocation12], 1 }
 0xadf   :  { %1682 = vsyncpa [#allocation12 + $0x1], 1 }
 0xae0   :  { %1683 = vsyncpa [#allocation15], 1 }
 0xae1   :  { %1685 = vsyncpa [#allocation15 + $0x1], 1 }

</bundles_post_ra>
